<compile_context>
chip_gen: v5e
topology: v5e:2x2
jax: 0.10.0
libtpu: 0.0.40
codegen_flags: <defaults>
</compile_context>

<pallas_src>
import functools
import math

import jax
import jax.numpy as jnp
from jax import lax
from jax.experimental import pallas as pl
from jax.experimental.pallas import tpu as pltpu


def _demix_block_kernel(eid_ref,              # scalar-prefetch ref (used by index_maps)
                        x_ref,                # (B_blk, L, E) f32 — block of batch elements
                        wqkv_ref,             # (E, 3E) bf16 — in_proj_weight^T, Q cols pre-scaled
                        bqkv_ref,             # (1, 3E) f32  — in_proj_bias, Q segment pre-scaled
                        wo_ref,               # (E, E)  bf16 — out_proj.weight^T
                        bo_ref,               # (1, E)  f32
                        g1_ref, b1_ref,       # (1, E)  f32  — norm1
                        w1_ref,               # (E, 4E) bf16 — selected expert ff[0].weight^T
                        bw1_ref,              # (1, 4E) f32
                        w2_ref,               # (4E, E) bf16 — selected expert ff[2].weight^T
                        bw2_ref,              # (1, E)  f32
                        g2_ref, b2_ref,       # (1, E)  f32  — norm2
                        o_ref,                # (B_blk, L, E) f32
                        *, heads):
    B, L, E = x_ref.shape
    H = heads
    hd = E // H
    R = B * L                                            # matmul M dim per grid step

    x = x_ref[...].reshape(R, E)                         # row-merge reshape (layout preserving)
    x_bf = x.astype(jnp.bfloat16)

    # ---- fused QKV projection: one big MXU matmul (scale already folded into Q) ----
    qkv = jnp.dot(x_bf, wqkv_ref[...],
                  preferred_element_type=jnp.float32) + bqkv_ref[0]          # (R, 3E) f32
    qkv3 = qkv.reshape(B, L, 3 * E)

    # ---- per-head attention, batched over the B_blk batch elements ----
    ctx_parts = []
    for h in range(H):
        q = qkv3[:, :, h * hd:(h + 1) * hd].astype(jnp.bfloat16)             # (B, L, hd)
        k = qkv3[:, :, E + h * hd:E + (h + 1) * hd].astype(jnp.bfloat16)
        v = qkv3[:, :, 2 * E + h * hd:2 * E + (h + 1) * hd].astype(jnp.bfloat16)

        s = jnp.einsum('bqd,bkd->bqk', q, k,
                       preferred_element_type=jnp.float32)                   # (B, L, L) f32
        s = s - jnp.max(s, axis=-1, keepdims=True)
        p = jnp.exp(s)
        p = p * pl.reciprocal(jnp.sum(p, axis=-1, keepdims=True), approx=True)
        ctx_parts.append(jnp.einsum('bqk,bkd->bqd', p.astype(jnp.bfloat16), v,
                                    preferred_element_type=jnp.float32))     # (B, L, hd) f32
    ctx = jnp.concatenate(ctx_parts, axis=-1).reshape(R, E)                   # (R, E) f32

    attn_out = jnp.dot(ctx.astype(jnp.bfloat16), wo_ref[...],
                       preferred_element_type=jnp.float32) + bo_ref[0]        # (R, E) f32

    # ---- LayerNorm (two-pass variance, f32) ----
    def layer_norm(t, gamma, beta):
        mu = jnp.mean(t, axis=-1, keepdims=True)
        c = t - mu
        var = jnp.mean(c * c, axis=-1, keepdims=True)
        return c * lax.rsqrt(var + 1e-5) * gamma + beta

    # residual + norm1
    y = layer_norm(attn_out + x, g1_ref[0], b1_ref[0])                        # (R, E) f32

    # ---- selected expert FFN: Linear(E,4E) -> ReLU -> Linear(4E,E) ----
    h1 = jnp.dot(y.astype(jnp.bfloat16), w1_ref[...],
                 preferred_element_type=jnp.float32) + bw1_ref[0]             # (R, 4E) f32
    h1 = jnp.maximum(h1, 0.0)
    f = jnp.dot(h1.astype(jnp.bfloat16), w2_ref[...],
                preferred_element_type=jnp.float32) + bw2_ref[0]              # (R, E) f32

    # residual + norm2 → lane-dense whole-block store
    o_ref[...] = layer_norm(f + y, g2_ref[0], b2_ref[0]).reshape(B, L, E)


def _pick_batch_block(N, L, max_rows=512):
    """Largest divisor of N such that B_blk * L stays a reasonable M tile."""
    best = 1
    for b in range(1, N + 1):
        if N % b == 0 and b * L <= max(max_rows, L):
            best = b
    return best


def _make_spec(shape, index_map, *, single_buffer=False):
    """BlockSpec helper; single_buffer=True requests Buffered(1) for grid-constant blocks."""
    if single_buffer:
        try:
            return pl.BlockSpec(shape, index_map, pipeline_mode=pl.Buffered(1))
        except TypeError:       # fallback if this jax build lacks pipeline_mode on BlockSpec
            pass
    return pl.BlockSpec(shape, index_map)


def demix_transformer_block(x, params, expert_id, *, heads):
    """Pallas TPU implementation of DeMIXTransformerBlock.forward(x, expert_id).

    x: (L, N, E) float32, seq-first (PyTorch nn.MultiheadAttention convention).
    params: PyTorch-layout parameters (see __main__). expert_id: int expert index.
    """
    L, N, E = x.shape
    F = 4 * E
    H = heads
    NE = params['w1'].shape[0]
    assert E % H == 0, "embed_size must be divisible by heads"
    assert E % 128 == 0, "E must be lane-dense (multiple of 128)"   # TODO(synk): pad otherwise
    assert L % 8 == 0, "L must be a multiple of 8 (sublane)"        # TODO(synk): pad otherwise
    hd = E // H

    eid = jnp.asarray([expert_id], dtype=jnp.int32)

    # ---- host-side layout plumbing (cheap XLA ops, hoisted out of the kernel) ----
    x_bm = jnp.transpose(x, (1, 0, 2))                                    # (N, L, E) batch-major
    # fold 1/sqrt(hd) attention scale into the Q rows of the fused in-proj weight/bias
    q_scale = jnp.concatenate([jnp.full((E,), 1.0 / math.sqrt(hd), jnp.float32),
                               jnp.ones((2 * E,), jnp.float32)])
    wqkv_t = (params['wqkv'] * q_scale[:, None]).T.astype(jnp.bfloat16)   # (E, 3E)
    bqkv = (params['bqkv'] * q_scale).reshape(1, 3 * E)
    wo_t = params['wo'].T.astype(jnp.bfloat16)                            # (E, E)
    bo = params['bo'].reshape(1, E)
    g1 = params['g1'].reshape(1, E)
    b1 = params['b1'].reshape(1, E)
    g2 = params['g2'].reshape(1, E)
    b2 = params['b2'].reshape(1, E)
    w1_t = jnp.transpose(params['w1'], (0, 2, 1)).astype(jnp.bfloat16)    # (NE, E, 4E)
    w2_t = jnp.transpose(params['w2'], (0, 2, 1)).astype(jnp.bfloat16)    # (NE, 4E, E)
    bw1 = params['bw1'].reshape(NE, 1, F)
    bw2 = params['bw2'].reshape(NE, 1, E)

    B_blk = _pick_batch_block(N, L)
    grid = (N // B_blk,)

    def whole(shape):
        nd = len(shape)
        return _make_spec(tuple(shape), lambda n, eid, nd=nd: (0,) * nd,
                          single_buffer=True)

    def expert(shape):
        tail = tuple(shape[1:])
        return _make_spec((None,) + tail,
                          lambda n, eid, nt=len(tail): (eid[0],) + (0,) * nt,
                          single_buffer=True)

    in_specs = [
        pl.BlockSpec((B_blk, L, E), lambda n, eid: (n, 0, 0)),  # x: B_blk batch elems / step
        whole(wqkv_t.shape), whole(bqkv.shape),                 # attention in-proj
        whole(wo_t.shape), whole(bo.shape),                     # attention out-proj
        whole(g1.shape), whole(b1.shape),                       # norm1
        expert(w1_t.shape), expert(bw1.shape),                  # selected expert ff[0]
        expert(w2_t.shape), expert(bw2.shape),                  # selected expert ff[2]
        whole(g2.shape), whole(b2.shape),                       # norm2
    ]

    # Explicit VMEM budget: bf16 weights (single-buffered, one expert) +
    # f32 activations (x / out double-buffered) + headroom; capped at v7x's 64 MiB.
    weight_bytes = 2 * (E * 3 * E + E * E + E * F + F * E)
    bias_bytes = 4 * (3 * E + 6 * E + F)
    act_bytes = 4 * B_blk * L * (2 * E + 3 * E + F + 2 * E) + 4 * B_blk * L * L * 2
    vmem_limit = int(min(64 * 1024 * 1024,
                         max(2 * (weight_bytes + bias_bytes + 2 * act_bytes),
                             16 * 1024 * 1024)))

    cost = pl.CostEstimate(
        flops=2 * N * L * (3 * E * E + 2 * L * E + E * E + 2 * E * F),
        transcendentals=N * H * L * L + 4 * N * L,
        bytes_accessed=2 * L * N * E * 4                          # x in + out (f32)
                       + 2 * (3 * E * E + E * E + E * F + F * E)  # bf16 weights (one expert)
                       + 4 * (3 * E + E + F + E + 4 * E),         # f32 biases + LN params
    )

    out_bm = pl.pallas_call(
        functools.partial(_demix_block_kernel, heads=heads),
        out_shape=jax.ShapeDtypeStruct((N, L, E), jnp.float32),
        grid_spec=pltpu.PrefetchScalarGridSpec(
            num_scalar_prefetch=1,
            grid=grid,
            in_specs=in_specs,
            out_specs=pl.BlockSpec((B_blk, L, E), lambda n, eid: (n, 0, 0)),
        ),
        compiler_params=pltpu.CompilerParams(
            dimension_semantics=("parallel",),   # batch-block axis → megacore on v7x
            vmem_limit_bytes=vmem_limit,
        ),
        cost_estimate=cost,
    )(eid, x_bm, wqkv_t, bqkv, wo_t, bo, g1, b1,
      w1_t, bw1, w2_t, bw2, g2, b2)

    return jnp.transpose(out_bm, (1, 0, 2))      # back to (L, N, E) seq-first


def _reference(x, params, expert_id, *, heads):
    """Pure-JAX f32 reference replicating the PyTorch module semantics."""
    L, N, E = x.shape
    H, hd = heads, E // heads
    xf = x.reshape(L * N, E)
    qkv = xf @ params['wqkv'].T + params['bqkv']
    q = jnp.swapaxes(qkv[:, :E].reshape(L, N * H, hd), 0, 1)
    k = jnp.swapaxes(qkv[:, E:2 * E].reshape(L, N * H, hd), 0, 1)
    v = jnp.swapaxes(qkv[:, 2 * E:].reshape(L, N * H, hd), 0, 1)
    s = jnp.einsum('bld,bmd->blm', q, k) / jnp.sqrt(jnp.float32(hd))
    p = jax.nn.softmax(s, axis=-1)
    ctx = jnp.swapaxes(jnp.einsum('blm,bmd->bld', p, v), 0, 1).reshape(L * N, E)
    attn = ctx @ params['wo'].T + params['bo']

    def ln(t, g, b):
        mu = jnp.mean(t, -1, keepdims=True)
        var = jnp.mean((t - mu) ** 2, -1, keepdims=True)
        return (t - mu) * jax.lax.rsqrt(var + 1e-5) * g + b

    y = ln(attn + xf, params['g1'], params['b1'])
    h = jnp.maximum(y @ params['w1'][expert_id].T + params['bw1'][expert_id], 0.0)
    f = h @ params['w2'][expert_id].T + params['bw2'][expert_id]
    z = ln(f + y, params['g2'], params['b2'])
    return z.reshape(L, N, E)


if __name__ == "__main__":
    # Small demo shapes; E chosen as a lane-dense multiple of 128.
    L, N, E, H, NUM_EXPERTS = 8, 2, 128, 4, 3
    expert_id = 1

    key = jax.random.PRNGKey(0)
    ks = jax.random.split(key, 10)

    def init(k, shape, scale=0.05):
        return jax.random.normal(k, shape, jnp.float32) * scale

    # PyTorch-layout parameters (nn.MultiheadAttention / nn.Linear conventions).
    params = {
        'wqkv': init(ks[0], (3 * E, E)),                  # attention.in_proj_weight
        'bqkv': init(ks[1], (3 * E,)),                    # attention.in_proj_bias
        'wo':   init(ks[2], (E, E)),                      # attention.out_proj.weight
        'bo':   init(ks[3], (E,)),                        # attention.out_proj.bias
        'g1':   jnp.ones((E,), jnp.float32),              # norm1.weight
        'b1':   jnp.zeros((E,), jnp.float32),             # norm1.bias
        'w1':   init(ks[4], (NUM_EXPERTS, 4 * E, E)),     # experts[i].ff[0].weight
        'bw1':  init(ks[5], (NUM_EXPERTS, 4 * E)),        # experts[i].ff[0].bias
        'w2':   init(ks[6], (NUM_EXPERTS, E, 4 * E)),     # experts[i].ff[2].weight
        'bw2':  init(ks[7], (NUM_EXPERTS, E)),            # experts[i].ff[2].bias
        'g2':   jnp.ones((E,), jnp.float32),              # norm2.weight
        'b2':   jnp.zeros((E,), jnp.float32),             # norm2.bias
    }
    x = jax.random.normal(ks[8], (L, N, E), jnp.float32)

    out = jax.block_until_ready(demix_transformer_block(x, params, expert_id, heads=H))
    ref = _reference(x, params, expert_id, heads=H)

    assert out.shape == (L, N, E)
    # bf16 MXU inputs (f32 accumulation) + approx reciprocal vs pure-f32 reference.
    assert jnp.allclose(out, ref, atol=2e-2, rtol=2e-2), (
        f"mismatch vs reference, max abs err {jnp.max(jnp.abs(out - ref))}")
    print("KERNEL_OK")
</pallas_src>

<mosaic_0001>
module attributes {stable_mosaic.version = 11 : i64} {
  func.func @_demix_block_kernel(%arg0: i32, %arg1: memref<1xi32, #tpu.memory_space<smem>>, %arg2: memref<2x8x128xf32, #tpu.memory_space<vmem>>, %arg3: memref<128x384xbf16, #tpu.memory_space<vmem>>, %arg4: memref<1x384xf32, #tpu.memory_space<vmem>>, %arg5: memref<128x128xbf16, #tpu.memory_space<vmem>>, %arg6: memref<1x128xf32, #tpu.memory_space<vmem>>, %arg7: memref<1x128xf32, #tpu.memory_space<vmem>>, %arg8: memref<1x128xf32, #tpu.memory_space<vmem>>, %arg9: memref<1x128x512xbf16, #tpu.memory_space<vmem>>, %arg10: memref<1x1x512xf32, #tpu.memory_space<vmem>>, %arg11: memref<1x512x128xbf16, #tpu.memory_space<vmem>>, %arg12: memref<1x1x128xf32, #tpu.memory_space<vmem>>, %arg13: memref<1x128xf32, #tpu.memory_space<vmem>>, %arg14: memref<1x128xf32, #tpu.memory_space<vmem>>, %arg15: memref<2x8x128xf32, #tpu.memory_space<vmem>>) attributes {dimension_semantics = [#tpu.dimension_semantics<parallel>], iteration_bounds = array<i64: 1>, scalar_prefetch = 1 : i64, scratch_operands = 0 : i64, tpu.core_type = #tpu.core_type<tc>, window_params = [{transform_indices = @transform_0, window_bounds = array<i64: 2, 8, 128>}, {pipeline_mode = #tpu.pipeline_mode<synchronous>, transform_indices = @transform_1, window_bounds = array<i64: 128, 384>}, {pipeline_mode = #tpu.pipeline_mode<synchronous>, transform_indices = @transform_2, window_bounds = array<i64: 1, 384>}, {pipeline_mode = #tpu.pipeline_mode<synchronous>, transform_indices = @transform_3, window_bounds = array<i64: 128, 128>}, {pipeline_mode = #tpu.pipeline_mode<synchronous>, transform_indices = @transform_4, window_bounds = array<i64: 1, 128>}, {pipeline_mode = #tpu.pipeline_mode<synchronous>, transform_indices = @transform_5, window_bounds = array<i64: 1, 128>}, {pipeline_mode = #tpu.pipeline_mode<synchronous>, transform_indices = @transform_6, window_bounds = array<i64: 1, 128>}, {pipeline_mode = #tpu.pipeline_mode<synchronous>, transform_indices = @transform_7, window_bounds = array<i64: 1, 128, 512>}, {pipeline_mode = #tpu.pipeline_mode<synchronous>, transform_indices = @transform_8, window_bounds = array<i64: 1, 1, 512>}, {pipeline_mode = #tpu.pipeline_mode<synchronous>, transform_indices = @transform_9, window_bounds = array<i64: 1, 512, 128>}, {pipeline_mode = #tpu.pipeline_mode<synchronous>, transform_indices = @transform_10, window_bounds = array<i64: 1, 1, 128>}, {pipeline_mode = #tpu.pipeline_mode<synchronous>, transform_indices = @transform_11, window_bounds = array<i64: 1, 128>}, {pipeline_mode = #tpu.pipeline_mode<synchronous>, transform_indices = @transform_12, window_bounds = array<i64: 1, 128>}, {transform_indices = @transform_13, window_bounds = array<i64: 2, 8, 128>}]} {
    %c0 = arith.constant 0 : index
    %c0_0 = arith.constant 0 : index
    %c0_1 = arith.constant 0 : index
    %0 = vector.load %arg2[%c0, %c0_0, %c0_1] : memref<2x8x128xf32, #tpu.memory_space<vmem>>, vector<2x8x128xf32>
    %1 = vector.shape_cast %0 : vector<2x8x128xf32> to vector<16x128xf32>
    %2 = arith.truncf %1 : vector<16x128xf32> to vector<16x128xbf16>
    %c0_2 = arith.constant 0 : index
    %c0_3 = arith.constant 0 : index
    %3 = vector.load %arg3[%c0_2, %c0_3] : memref<128x384xbf16, #tpu.memory_space<vmem>>, vector<128x384xbf16>
    %cst = arith.constant dense<0.000000e+00> : vector<16x384xf32>
    %4 = tpu.matmul %2, %3, %cst {dimension_numbers = #tpu.dot_dimension_numbers<[1], [0], [0], [1], [0, 0, 1, 1], [], []>} : vector<16x128xbf16>, vector<128x384xbf16>, vector<16x384xf32> -> vector<16x384xf32>
    %c0_4 = arith.constant 0 : index
    %c0_5 = arith.constant 0 : index
    %5 = vector.load %arg4[%c0_4, %c0_5] : memref<1x384xf32, #tpu.memory_space<vmem>>, vector<1x384xf32>
    %6 = vector.shape_cast %5 : vector<1x384xf32> to vector<384xf32>
    %7 = vector.shape_cast %6 : vector<384xf32> to vector<1x384xf32>
    %8 = vector.broadcast %7 : vector<1x384xf32> to vector<16x384xf32>
    %9 = arith.addf %4, %8 : vector<16x384xf32>
    %10 = vector.shape_cast %9 : vector<16x384xf32> to vector<2x8x384xf32>
    %11 = vector.extract_strided_slice %10 {offsets = [0, 0, 0], sizes = [2, 8, 32], strides = [1, 1, 1]} : vector<2x8x384xf32> to vector<2x8x32xf32>
    %12 = arith.truncf %11 : vector<2x8x32xf32> to vector<2x8x32xbf16>
    %13 = vector.extract_strided_slice %10 {offsets = [0, 0, 128], sizes = [2, 8, 32], strides = [1, 1, 1]} : vector<2x8x384xf32> to vector<2x8x32xf32>
    %14 = arith.truncf %13 : vector<2x8x32xf32> to vector<2x8x32xbf16>
    %15 = vector.extract_strided_slice %10 {offsets = [0, 0, 256], sizes = [2, 8, 32], strides = [1, 1, 1]} : vector<2x8x384xf32> to vector<2x8x32xf32>
    %16 = arith.truncf %15 : vector<2x8x32xf32> to vector<2x8x32xbf16>
    "tpu.trace_start"() <{level = 10 : i32, message = "bqd,bkd->bqk"}> : () -> ()
    %cst_6 = arith.constant dense<0.000000e+00> : vector<2x8x8xf32>
    %17 = tpu.matmul %12, %14, %cst_6 {dimension_numbers = #tpu.dot_dimension_numbers<[2], [2], [1], [1], [0, 0, 0, 1, 1, 1], [0], [0]>} : vector<2x8x32xbf16>, vector<2x8x32xbf16>, vector<2x8x8xf32> -> vector<2x8x8xf32>
    "tpu.trace_stop"() : () -> ()
    %cst_7 = arith.constant dense<0xFF800000> : vector<2x8xf32>
    %18 = vector.multi_reduction <maximumf>, %17, %cst_7 [2] : vector<2x8x8xf32> to vector<2x8xf32>
    %19 = vector.shape_cast %18 : vector<2x8xf32> to vector<2x8x1xf32>
    %20 = vector.broadcast %19 : vector<2x8x1xf32> to vector<2x8x8xf32>
    %21 = arith.subf %17, %20 : vector<2x8x8xf32>
    %22 = math.exp %21 : vector<2x8x8xf32>
    %cst_8 = arith.constant dense<0.000000e+00> : vector<2x8xf32>
    %23 = vector.multi_reduction <add>, %22, %cst_8 [2] : vector<2x8x8xf32> to vector<2x8xf32>
    %24 = vector.shape_cast %23 : vector<2x8xf32> to vector<2x8x1xf32>
    %25 = tpu.reciprocal %24 {approx = true} : vector<2x8x1xf32> -> vector<2x8x1xf32>
    %26 = vector.broadcast %25 : vector<2x8x1xf32> to vector<2x8x8xf32>
    %27 = arith.mulf %22, %26 : vector<2x8x8xf32>
    %28 = arith.truncf %27 : vector<2x8x8xf32> to vector<2x8x8xbf16>
    "tpu.trace_start"() <{level = 10 : i32, message = "bqk,bkd->bqd"}> : () -> ()
    %cst_9 = arith.constant dense<0.000000e+00> : vector<2x8x32xf32>
    %29 = tpu.matmul %28, %16, %cst_9 {dimension_numbers = #tpu.dot_dimension_numbers<[2], [1], [1], [2], [0, 0, 0, 1, 1, 2], [0], [0]>} : vector<2x8x8xbf16>, vector<2x8x32xbf16>, vector<2x8x32xf32> -> vector<2x8x32xf32>
    "tpu.trace_stop"() : () -> ()
    %30 = vector.extract_strided_slice %10 {offsets = [0, 0, 32], sizes = [2, 8, 32], strides = [1, 1, 1]} : vector<2x8x384xf32> to vector<2x8x32xf32>
    %31 = arith.truncf %30 : vector<2x8x32xf32> to vector<2x8x32xbf16>
    %32 = vector.extract_strided_slice %10 {offsets = [0, 0, 160], sizes = [2, 8, 32], strides = [1, 1, 1]} : vector<2x8x384xf32> to vector<2x8x32xf32>
    %33 = arith.truncf %32 : vector<2x8x32xf32> to vector<2x8x32xbf16>
    %34 = vector.extract_strided_slice %10 {offsets = [0, 0, 288], sizes = [2, 8, 32], strides = [1, 1, 1]} : vector<2x8x384xf32> to vector<2x8x32xf32>
    %35 = arith.truncf %34 : vector<2x8x32xf32> to vector<2x8x32xbf16>
    "tpu.trace_start"() <{level = 10 : i32, message = "bqd,bkd->bqk"}> : () -> ()
    %cst_10 = arith.constant dense<0.000000e+00> : vector<2x8x8xf32>
    %36 = tpu.matmul %31, %33, %cst_10 {dimension_numbers = #tpu.dot_dimension_numbers<[2], [2], [1], [1], [0, 0, 0, 1, 1, 1], [0], [0]>} : vector<2x8x32xbf16>, vector<2x8x32xbf16>, vector<2x8x8xf32> -> vector<2x8x8xf32>
    "tpu.trace_stop"() : () -> ()
    %cst_11 = arith.constant dense<0xFF800000> : vector<2x8xf32>
    %37 = vector.multi_reduction <maximumf>, %36, %cst_11 [2] : vector<2x8x8xf32> to vector<2x8xf32>
    %38 = vector.shape_cast %37 : vector<2x8xf32> to vector<2x8x1xf32>
    %39 = vector.broadcast %38 : vector<2x8x1xf32> to vector<2x8x8xf32>
    %40 = arith.subf %36, %39 : vector<2x8x8xf32>
    %41 = math.exp %40 : vector<2x8x8xf32>
    %cst_12 = arith.constant dense<0.000000e+00> : vector<2x8xf32>
    %42 = vector.multi_reduction <add>, %41, %cst_12 [2] : vector<2x8x8xf32> to vector<2x8xf32>
    %43 = vector.shape_cast %42 : vector<2x8xf32> to vector<2x8x1xf32>
    %44 = tpu.reciprocal %43 {approx = true} : vector<2x8x1xf32> -> vector<2x8x1xf32>
    %45 = vector.broadcast %44 : vector<2x8x1xf32> to vector<2x8x8xf32>
    %46 = arith.mulf %41, %45 : vector<2x8x8xf32>
    %47 = arith.truncf %46 : vector<2x8x8xf32> to vector<2x8x8xbf16>
    "tpu.trace_start"() <{level = 10 : i32, message = "bqk,bkd->bqd"}> : () -> ()
    %cst_13 = arith.constant dense<0.000000e+00> : vector<2x8x32xf32>
    %48 = tpu.matmul %47, %35, %cst_13 {dimension_numbers = #tpu.dot_dimension_numbers<[2], [1], [1], [2], [0, 0, 0, 1, 1, 2], [0], [0]>} : vector<2x8x8xbf16>, vector<2x8x32xbf16>, vector<2x8x32xf32> -> vector<2x8x32xf32>
    "tpu.trace_stop"() : () -> ()
    %49 = vector.extract_strided_slice %10 {offsets = [0, 0, 64], sizes = [2, 8, 32], strides = [1, 1, 1]} : vector<2x8x384xf32> to vector<2x8x32xf32>
    %50 = arith.truncf %49 : vector<2x8x32xf32> to vector<2x8x32xbf16>
    %51 = vector.extract_strided_slice %10 {offsets = [0, 0, 192], sizes = [2, 8, 32], strides = [1, 1, 1]} : vector<2x8x384xf32> to vector<2x8x32xf32>
    %52 = arith.truncf %51 : vector<2x8x32xf32> to vector<2x8x32xbf16>
    %53 = vector.extract_strided_slice %10 {offsets = [0, 0, 320], sizes = [2, 8, 32], strides = [1, 1, 1]} : vector<2x8x384xf32> to vector<2x8x32xf32>
    %54 = arith.truncf %53 : vector<2x8x32xf32> to vector<2x8x32xbf16>
    "tpu.trace_start"() <{level = 10 : i32, message = "bqd,bkd->bqk"}> : () -> ()
    %cst_14 = arith.constant dense<0.000000e+00> : vector<2x8x8xf32>
    %55 = tpu.matmul %50, %52, %cst_14 {dimension_numbers = #tpu.dot_dimension_numbers<[2], [2], [1], [1], [0, 0, 0, 1, 1, 1], [0], [0]>} : vector<2x8x32xbf16>, vector<2x8x32xbf16>, vector<2x8x8xf32> -> vector<2x8x8xf32>
    "tpu.trace_stop"() : () -> ()
    %cst_15 = arith.constant dense<0xFF800000> : vector<2x8xf32>
    %56 = vector.multi_reduction <maximumf>, %55, %cst_15 [2] : vector<2x8x8xf32> to vector<2x8xf32>
    %57 = vector.shape_cast %56 : vector<2x8xf32> to vector<2x8x1xf32>
    %58 = vector.broadcast %57 : vector<2x8x1xf32> to vector<2x8x8xf32>
    %59 = arith.subf %55, %58 : vector<2x8x8xf32>
    %60 = math.exp %59 : vector<2x8x8xf32>
    %cst_16 = arith.constant dense<0.000000e+00> : vector<2x8xf32>
    %61 = vector.multi_reduction <add>, %60, %cst_16 [2] : vector<2x8x8xf32> to vector<2x8xf32>
    %62 = vector.shape_cast %61 : vector<2x8xf32> to vector<2x8x1xf32>
    %63 = tpu.reciprocal %62 {approx = true} : vector<2x8x1xf32> -> vector<2x8x1xf32>
    %64 = vector.broadcast %63 : vector<2x8x1xf32> to vector<2x8x8xf32>
    %65 = arith.mulf %60, %64 : vector<2x8x8xf32>
    %66 = arith.truncf %65 : vector<2x8x8xf32> to vector<2x8x8xbf16>
    "tpu.trace_start"() <{level = 10 : i32, message = "bqk,bkd->bqd"}> : () -> ()
    %cst_17 = arith.constant dense<0.000000e+00> : vector<2x8x32xf32>
    %67 = tpu.matmul %66, %54, %cst_17 {dimension_numbers = #tpu.dot_dimension_numbers<[2], [1], [1], [2], [0, 0, 0, 1, 1, 2], [0], [0]>} : vector<2x8x8xbf16>, vector<2x8x32xbf16>, vector<2x8x32xf32> -> vector<2x8x32xf32>
    "tpu.trace_stop"() : () -> ()
    %68 = vector.extract_strided_slice %10 {offsets = [0, 0, 96], sizes = [2, 8, 32], strides = [1, 1, 1]} : vector<2x8x384xf32> to vector<2x8x32xf32>
    %69 = arith.truncf %68 : vector<2x8x32xf32> to vector<2x8x32xbf16>
    %70 = vector.extract_strided_slice %10 {offsets = [0, 0, 224], sizes = [2, 8, 32], strides = [1, 1, 1]} : vector<2x8x384xf32> to vector<2x8x32xf32>
    %71 = arith.truncf %70 : vector<2x8x32xf32> to vector<2x8x32xbf16>
    %72 = vector.extract_strided_slice %10 {offsets = [0, 0, 352], sizes = [2, 8, 32], strides = [1, 1, 1]} : vector<2x8x384xf32> to vector<2x8x32xf32>
    %73 = arith.truncf %72 : vector<2x8x32xf32> to vector<2x8x32xbf16>
    "tpu.trace_start"() <{level = 10 : i32, message = "bqd,bkd->bqk"}> : () -> ()
    %cst_18 = arith.constant dense<0.000000e+00> : vector<2x8x8xf32>
    %74 = tpu.matmul %69, %71, %cst_18 {dimension_numbers = #tpu.dot_dimension_numbers<[2], [2], [1], [1], [0, 0, 0, 1, 1, 1], [0], [0]>} : vector<2x8x32xbf16>, vector<2x8x32xbf16>, vector<2x8x8xf32> -> vector<2x8x8xf32>
    "tpu.trace_stop"() : () -> ()
    %cst_19 = arith.constant dense<0xFF800000> : vector<2x8xf32>
    %75 = vector.multi_reduction <maximumf>, %74, %cst_19 [2] : vector<2x8x8xf32> to vector<2x8xf32>
    %76 = vector.shape_cast %75 : vector<2x8xf32> to vector<2x8x1xf32>
    %77 = vector.broadcast %76 : vector<2x8x1xf32> to vector<2x8x8xf32>
    %78 = arith.subf %74, %77 : vector<2x8x8xf32>
    %79 = math.exp %78 : vector<2x8x8xf32>
    %cst_20 = arith.constant dense<0.000000e+00> : vector<2x8xf32>
    %80 = vector.multi_reduction <add>, %79, %cst_20 [2] : vector<2x8x8xf32> to vector<2x8xf32>
    %81 = vector.shape_cast %80 : vector<2x8xf32> to vector<2x8x1xf32>
    %82 = tpu.reciprocal %81 {approx = true} : vector<2x8x1xf32> -> vector<2x8x1xf32>
    %83 = vector.broadcast %82 : vector<2x8x1xf32> to vector<2x8x8xf32>
    %84 = arith.mulf %79, %83 : vector<2x8x8xf32>
    %85 = arith.truncf %84 : vector<2x8x8xf32> to vector<2x8x8xbf16>
    "tpu.trace_start"() <{level = 10 : i32, message = "bqk,bkd->bqd"}> : () -> ()
    %cst_21 = arith.constant dense<0.000000e+00> : vector<2x8x32xf32>
    %86 = tpu.matmul %85, %73, %cst_21 {dimension_numbers = #tpu.dot_dimension_numbers<[2], [1], [1], [2], [0, 0, 0, 1, 1, 2], [0], [0]>} : vector<2x8x8xbf16>, vector<2x8x32xbf16>, vector<2x8x32xf32> -> vector<2x8x32xf32>
    "tpu.trace_stop"() : () -> ()
    %87 = tpu.concatenate %29, %48, %67, %86 in 2 : vector<2x8x32xf32>, vector<2x8x32xf32>, vector<2x8x32xf32>, vector<2x8x32xf32> -> vector<2x8x128xf32>
    %88 = vector.shape_cast %87 : vector<2x8x128xf32> to vector<16x128xf32>
    %89 = arith.truncf %88 : vector<16x128xf32> to vector<16x128xbf16>
    %c0_22 = arith.constant 0 : index
    %c0_23 = arith.constant 0 : index
    %90 = vector.load %arg5[%c0_22, %c0_23] : memref<128x128xbf16, #tpu.memory_space<vmem>>, vector<128x128xbf16>
    %cst_24 = arith.constant dense<0.000000e+00> : vector<16x128xf32>
    %91 = tpu.matmul %89, %90, %cst_24 {dimension_numbers = #tpu.dot_dimension_numbers<[1], [0], [0], [1], [0, 0, 1, 1], [], []>} : vector<16x128xbf16>, vector<128x128xbf16>, vector<16x128xf32> -> vector<16x128xf32>
    %c0_25 = arith.constant 0 : index
    %c0_26 = arith.constant 0 : index
    %92 = vector.load %arg6[%c0_25, %c0_26] : memref<1x128xf32, #tpu.memory_space<vmem>>, vector<1x128xf32>
    %93 = vector.shape_cast %92 : vector<1x128xf32> to vector<128xf32>
    %94 = vector.shape_cast %93 : vector<128xf32> to vector<1x128xf32>
    %95 = vector.broadcast %94 : vector<1x128xf32> to vector<16x128xf32>
    %96 = arith.addf %91, %95 : vector<16x128xf32>
    %97 = arith.addf %96, %1 : vector<16x128xf32>
    %c0_27 = arith.constant 0 : index
    %c0_28 = arith.constant 0 : index
    %98 = vector.load %arg7[%c0_27, %c0_28] : memref<1x128xf32, #tpu.memory_space<vmem>>, vector<1x128xf32>
    %99 = vector.shape_cast %98 : vector<1x128xf32> to vector<128xf32>
    %c0_29 = arith.constant 0 : index
    %c0_30 = arith.constant 0 : index
    %100 = vector.load %arg8[%c0_29, %c0_30] : memref<1x128xf32, #tpu.memory_space<vmem>>, vector<1x128xf32>
    %101 = vector.shape_cast %100 : vector<1x128xf32> to vector<128xf32>
    %cst_31 = arith.constant dense<0.000000e+00> : vector<16xf32>
    %102 = vector.multi_reduction <add>, %97, %cst_31 [1] : vector<16x128xf32> to vector<16xf32>
    %103 = vector.shape_cast %102 : vector<16xf32> to vector<16x1xf32>
    %cst_32 = arith.constant 1.280000e+02 : f32
    %104 = vector.broadcast %cst_32 : f32 to vector<16x1xf32>
    %105 = arith.divf %103, %104 : vector<16x1xf32>
    %106 = vector.broadcast %105 : vector<16x1xf32> to vector<16x128xf32>
    %107 = arith.subf %97, %106 : vector<16x128xf32>
    %108 = arith.mulf %107, %107 : vector<16x128xf32>
    %cst_33 = arith.constant dense<0.000000e+00> : vector<16xf32>
    %109 = vector.multi_reduction <add>, %108, %cst_33 [1] : vector<16x128xf32> to vector<16xf32>
    %110 = vector.shape_cast %109 : vector<16xf32> to vector<16x1xf32>
    %cst_34 = arith.constant 1.280000e+02 : f32
    %111 = vector.broadcast %cst_34 : f32 to vector<16x1xf32>
    %112 = arith.divf %110, %111 : vector<16x1xf32>
    %cst_35 = arith.constant 9.99999974E-6 : f32
    %113 = vector.broadcast %cst_35 : f32 to vector<16x1xf32>
    %114 = arith.addf %112, %113 : vector<16x1xf32>
    %115 = math.rsqrt %114 : vector<16x1xf32>
    %116 = vector.broadcast %115 : vector<16x1xf32> to vector<16x128xf32>
    %117 = arith.mulf %107, %116 : vector<16x128xf32>
    %118 = vector.shape_cast %99 : vector<128xf32> to vector<1x128xf32>
    %119 = vector.broadcast %118 : vector<1x128xf32> to vector<16x128xf32>
    %120 = arith.mulf %117, %119 : vector<16x128xf32>
    %121 = vector.shape_cast %101 : vector<128xf32> to vector<1x128xf32>
    %122 = vector.broadcast %121 : vector<1x128xf32> to vector<16x128xf32>
    %123 = arith.addf %120, %122 : vector<16x128xf32>
    %124 = arith.truncf %123 : vector<16x128xf32> to vector<16x128xbf16>
    %c0_36 = arith.constant 0 : index
    %c0_37 = arith.constant 0 : index
    %c0_38 = arith.constant 0 : index
    %125 = vector.load %arg9[%c0_36, %c0_37, %c0_38] : memref<1x128x512xbf16, #tpu.memory_space<vmem>>, vector<1x128x512xbf16>
    %126 = vector.shape_cast %125 : vector<1x128x512xbf16> to vector<128x512xbf16>
    %cst_39 = arith.constant dense<0.000000e+00> : vector<16x512xf32>
    %127 = tpu.matmul %124, %126, %cst_39 {dimension_numbers = #tpu.dot_dimension_numbers<[1], [0], [0], [1], [0, 0, 1, 1], [], []>} : vector<16x128xbf16>, vector<128x512xbf16>, vector<16x512xf32> -> vector<16x512xf32>
    %c0_40 = arith.constant 0 : index
    %c0_41 = arith.constant 0 : index
    %c0_42 = arith.constant 0 : index
    %128 = vector.load %arg10[%c0_40, %c0_41, %c0_42] : memref<1x1x512xf32, #tpu.memory_space<vmem>>, vector<1x1x512xf32>
    %129 = vector.shape_cast %128 : vector<1x1x512xf32> to vector<512xf32>
    %130 = vector.shape_cast %129 : vector<512xf32> to vector<1x512xf32>
    %131 = vector.broadcast %130 : vector<1x512xf32> to vector<16x512xf32>
    %132 = arith.addf %127, %131 : vector<16x512xf32>
    %cst_43 = arith.constant 0.000000e+00 : f32
    %133 = vector.broadcast %cst_43 : f32 to vector<16x512xf32>
    %134 = arith.maximumf %132, %133 : vector<16x512xf32>
    %135 = arith.truncf %134 : vector<16x512xf32> to vector<16x512xbf16>
    %c0_44 = arith.constant 0 : index
    %c0_45 = arith.constant 0 : index
    %c0_46 = arith.constant 0 : index
    %136 = vector.load %arg11[%c0_44, %c0_45, %c0_46] : memref<1x512x128xbf16, #tpu.memory_space<vmem>>, vector<1x512x128xbf16>
    %137 = vector.shape_cast %136 : vector<1x512x128xbf16> to vector<512x128xbf16>
    %cst_47 = arith.constant dense<0.000000e+00> : vector<16x128xf32>
    %138 = tpu.matmul %135, %137, %cst_47 {dimension_numbers = #tpu.dot_dimension_numbers<[1], [0], [0], [1], [0, 0, 1, 1], [], []>} : vector<16x512xbf16>, vector<512x128xbf16>, vector<16x128xf32> -> vector<16x128xf32>
    %c0_48 = arith.constant 0 : index
    %c0_49 = arith.constant 0 : index
    %c0_50 = arith.constant 0 : index
    %139 = vector.load %arg12[%c0_48, %c0_49, %c0_50] : memref<1x1x128xf32, #tpu.memory_space<vmem>>, vector<1x1x128xf32>
    %140 = vector.shape_cast %139 : vector<1x1x128xf32> to vector<128xf32>
    %141 = vector.shape_cast %140 : vector<128xf32> to vector<1x128xf32>
    %142 = vector.broadcast %141 : vector<1x128xf32> to vector<16x128xf32>
    %143 = arith.addf %138, %142 : vector<16x128xf32>
    %144 = arith.addf %143, %123 : vector<16x128xf32>
    %c0_51 = arith.constant 0 : index
    %c0_52 = arith.constant 0 : index
    %145 = vector.load %arg13[%c0_51, %c0_52] : memref<1x128xf32, #tpu.memory_space<vmem>>, vector<1x128xf32>
    %146 = vector.shape_cast %145 : vector<1x128xf32> to vector<128xf32>
    %c0_53 = arith.constant 0 : index
    %c0_54 = arith.constant 0 : index
    %147 = vector.load %arg14[%c0_53, %c0_54] : memref<1x128xf32, #tpu.memory_space<vmem>>, vector<1x128xf32>
    %148 = vector.shape_cast %147 : vector<1x128xf32> to vector<128xf32>
    %cst_55 = arith.constant dense<0.000000e+00> : vector<16xf32>
    %149 = vector.multi_reduction <add>, %144, %cst_55 [1] : vector<16x128xf32> to vector<16xf32>
    %150 = vector.shape_cast %149 : vector<16xf32> to vector<16x1xf32>
    %cst_56 = arith.constant 1.280000e+02 : f32
    %151 = vector.broadcast %cst_56 : f32 to vector<16x1xf32>
    %152 = arith.divf %150, %151 : vector<16x1xf32>
    %153 = vector.broadcast %152 : vector<16x1xf32> to vector<16x128xf32>
    %154 = arith.subf %144, %153 : vector<16x128xf32>
    %155 = arith.mulf %154, %154 : vector<16x128xf32>
    %cst_57 = arith.constant dense<0.000000e+00> : vector<16xf32>
    %156 = vector.multi_reduction <add>, %155, %cst_57 [1] : vector<16x128xf32> to vector<16xf32>
    %157 = vector.shape_cast %156 : vector<16xf32> to vector<16x1xf32>
    %cst_58 = arith.constant 1.280000e+02 : f32
    %158 = vector.broadcast %cst_58 : f32 to vector<16x1xf32>
    %159 = arith.divf %157, %158 : vector<16x1xf32>
    %cst_59 = arith.constant 9.99999974E-6 : f32
    %160 = vector.broadcast %cst_59 : f32 to vector<16x1xf32>
    %161 = arith.addf %159, %160 : vector<16x1xf32>
    %162 = math.rsqrt %161 : vector<16x1xf32>
    %163 = vector.broadcast %162 : vector<16x1xf32> to vector<16x128xf32>
    %164 = arith.mulf %154, %163 : vector<16x128xf32>
    %165 = vector.shape_cast %146 : vector<128xf32> to vector<1x128xf32>
    %166 = vector.broadcast %165 : vector<1x128xf32> to vector<16x128xf32>
    %167 = arith.mulf %164, %166 : vector<16x128xf32>
    %168 = vector.shape_cast %148 : vector<128xf32> to vector<1x128xf32>
    %169 = vector.broadcast %168 : vector<1x128xf32> to vector<16x128xf32>
    %170 = arith.addf %167, %169 : vector<16x128xf32>
    %171 = vector.shape_cast %170 : vector<16x128xf32> to vector<2x8x128xf32>
    %c0_60 = arith.constant 0 : index
    %c0_61 = arith.constant 0 : index
    %c0_62 = arith.constant 0 : index
    %172 = vector.load %arg15[%c0_60, %c0_61, %c0_62] : memref<2x8x128xf32, #tpu.memory_space<vmem>>, vector<2x8x128xf32>
    tpu.vector_store %arg15[%c0_60, %c0_61, %c0_62], %171 {strides = array<i32>} : memref<2x8x128xf32, #tpu.memory_space<vmem>>, vector<2x8x128xf32>,
    return
  }
  func.func @transform_0(%arg0: i32, %arg1: memref<1xi32, #tpu.memory_space<smem>>) -> (i32, i32, i32) {
    %c0_i32 = arith.constant 0 : i32
    %c0_i32_0 = arith.constant 0 : i32
    %c0_i32_1 = arith.constant 0 : i32
    return %arg0, %c0_i32, %c0_i32_0 : i32, i32, i32
  }
  func.func @transform_1(%arg0: i32, %arg1: memref<1xi32, #tpu.memory_space<smem>>) -> (i32, i32) {
    %c0_i32 = arith.constant 0 : i32
    %c0_i32_0 = arith.constant 0 : i32
    %c0_i32_1 = arith.constant 0 : i32
    return %c0_i32, %c0_i32_0 : i32, i32
  }
  func.func @transform_2(%arg0: i32, %arg1: memref<1xi32, #tpu.memory_space<smem>>) -> (i32, i32) {
    %c0_i32 = arith.constant 0 : i32
    %c0_i32_0 = arith.constant 0 : i32
    %c0_i32_1 = arith.constant 0 : i32
    return %c0_i32, %c0_i32_0 : i32, i32
  }
  func.func @transform_3(%arg0: i32, %arg1: memref<1xi32, #tpu.memory_space<smem>>) -> (i32, i32) {
    %c0_i32 = arith.constant 0 : i32
    %c0_i32_0 = arith.constant 0 : i32
    %c0_i32_1 = arith.constant 0 : i32
    return %c0_i32, %c0_i32_0 : i32, i32
  }
  func.func @transform_4(%arg0: i32, %arg1: memref<1xi32, #tpu.memory_space<smem>>) -> (i32, i32) {
    %c0_i32 = arith.constant 0 : i32
    %c0_i32_0 = arith.constant 0 : i32
    %c0_i32_1 = arith.constant 0 : i32
    return %c0_i32, %c0_i32_0 : i32, i32
  }
  func.func @transform_5(%arg0: i32, %arg1: memref<1xi32, #tpu.memory_space<smem>>) -> (i32, i32) {
    %c0_i32 = arith.constant 0 : i32
    %c0_i32_0 = arith.constant 0 : i32
    %c0_i32_1 = arith.constant 0 : i32
    return %c0_i32, %c0_i32_0 : i32, i32
  }
  func.func @transform_6(%arg0: i32, %arg1: memref<1xi32, #tpu.memory_space<smem>>) -> (i32, i32) {
    %c0_i32 = arith.constant 0 : i32
    %c0_i32_0 = arith.constant 0 : i32
    %c0_i32_1 = arith.constant 0 : i32
    return %c0_i32, %c0_i32_0 : i32, i32
  }
  func.func @transform_7(%arg0: i32, %arg1: memref<1xi32, #tpu.memory_space<smem>>) -> (i32, i32, i32) {
    %c0 = arith.constant 0 : index
    %0 = memref.load %arg1[%c0] : memref<1xi32, #tpu.memory_space<smem>>
    %c0_i32 = arith.constant 0 : i32
    %c0_i32_0 = arith.constant 0 : i32
    %c0_i32_1 = arith.constant 0 : i32
    return %0, %c0_i32, %c0_i32_0 : i32, i32, i32
  }
  func.func @transform_8(%arg0: i32, %arg1: memref<1xi32, #tpu.memory_space<smem>>) -> (i32, i32, i32) {
    %c0 = arith.constant 0 : index
    %0 = memref.load %arg1[%c0] : memref<1xi32, #tpu.memory_space<smem>>
    %c0_i32 = arith.constant 0 : i32
    %c0_i32_0 = arith.constant 0 : i32
    %c0_i32_1 = arith.constant 0 : i32
    return %0, %c0_i32, %c0_i32_0 : i32, i32, i32
  }
  func.func @transform_9(%arg0: i32, %arg1: memref<1xi32, #tpu.memory_space<smem>>) -> (i32, i32, i32) {
    %c0 = arith.constant 0 : index
    %0 = memref.load %arg1[%c0] : memref<1xi32, #tpu.memory_space<smem>>
    %c0_i32 = arith.constant 0 : i32
    %c0_i32_0 = arith.constant 0 : i32
    %c0_i32_1 = arith.constant 0 : i32
    return %0, %c0_i32, %c0_i32_0 : i32, i32, i32
  }
  func.func @transform_10(%arg0: i32, %arg1: memref<1xi32, #tpu.memory_space<smem>>) -> (i32, i32, i32) {
    %c0 = arith.constant 0 : index
    %0 = memref.load %arg1[%c0] : memref<1xi32, #tpu.memory_space<smem>>
    %c0_i32 = arith.constant 0 : i32
    %c0_i32_0 = arith.constant 0 : i32
    %c0_i32_1 = arith.constant 0 : i32
    return %0, %c0_i32, %c0_i32_0 : i32, i32, i32
  }
  func.func @transform_11(%arg0: i32, %arg1: memref<1xi32, #tpu.memory_space<smem>>) -> (i32, i32) {
    %c0_i32 = arith.constant 0 : i32
    %c0_i32_0 = arith.constant 0 : i32
    %c0_i32_1 = arith.constant 0 : i32
    return %c0_i32, %c0_i32_0 : i32, i32
  }
  func.func @transform_12(%arg0: i32, %arg1: memref<1xi32, #tpu.memory_space<smem>>) -> (i32, i32) {
    %c0_i32 = arith.constant 0 : i32
    %c0_i32_0 = arith.constant 0 : i32
    %c0_i32_1 = arith.constant 0 : i32
    return %c0_i32, %c0_i32_0 : i32, i32
  }
  func.func @transform_13(%arg0: i32, %arg1: memref<1xi32, #tpu.memory_space<smem>>) -> (i32, i32, i32) {
    %c0_i32 = arith.constant 0 : i32
    %c0_i32_0 = arith.constant 0 : i32
    %c0_i32_1 = arith.constant 0 : i32
    return %arg0, %c0_i32, %c0_i32_0 : i32, i32, i32
  }
}

</mosaic_0001>

<bundles_post_ra>
// kernel: tpu_custom_call.1
= control target key start
LH: loop header
LB: loop body
LE: loop exit
PB: predicated region body
PF: predicated region fallthrough
CT: control target
= control target key end

     0   :  { %20 = vsyncpa [#allocation5], 0  ;;  %s2861_s0 = inlined_call_operand.<no memory space> [shape: s32[1], index: 0, kind: input, shape index: {}]   ;;  %s2862_s1 = inlined_call_operand.hbm [shape: f32[2,8,128], index: 1, kind: input, shape index: {}]   ;;  %s2863_s2 = inlined_call_operand.hbm [shape: bf16[128,384], index: 2, kind: input, shape index: {}]   ;;  %s2864_s3 = inlined_call_operand.vmem [shape: f32[1,384], index: 3, kind: input, shape index: {}]   ;;  %s2865_s4 = inlined_call_operand.hbm [shape: bf16[128,128], index: 4, kind: input, shape index: {}]   ;;  %s2866_s5 = inlined_call_operand.hbm [shape: f32[1,128], index: 5, kind: input, shape index: {}]   ;;  %s2867_s6 = inlined_call_operand.hbm [shape: f32[1,128], index: 6, kind: input, shape index: {}]   ;;  %s2868_s7 = inlined_call_operand.vmem [shape: f32[1,128], index: 7, kind: input, shape index: {}]   ;;  %s2869_s8 = inlined_call_operand.hbm [shape: bf16[3,128,512], index: 8, kind: input, shape index: {}]   ;;  %s2870_s9 = inlined_call_operand.hbm [shape: f32[3,1,512], index: 9, kind: input, shape index: {}]   ;;  %s2871_s10 = inlined_call_operand.hbm [shape: bf16[3,512,128], index: 10, kind: input, shape index: {}]   ;;  %s2872_s11 = inlined_call_operand.vmem [shape: f32[3,1,128], index: 11, kind: input, shape index: {}]   ;;  %s2873_s12 = inlined_call_operand.vmem [shape: f32[1,128], index: 12, kind: input, shape index: {}]   ;;  %s2874_s13 = inlined_call_operand.vmem [shape: f32[1,128], index: 13, kind: input, shape index: {}]   ;;  %s2875_s14 = inlined_call_operand.hbm [shape: f32[2,8,128], index: 14, kind: output, shape index: {}]  }
   0x1   :  { %21 = vsyncpa [#allocation8], 0 }
   0x2   :  { %22 = vsyncpa [#allocation11], 0 }
   0x3   :  { %23 = vsyncpa [#allocation14], 0 }
   0x4   :  { %24 = vsyncpa [#allocation17], 0  ;;  %s43_s15 = sshll.u32 %s2863_s2, 4  ;;  %s44_s15 = int_to_ptr.hbm [resolvable:$true] %s43_s15 }
   0x5   :  { %25 = vsyncpa [#allocation6], 0  ;;  %s2536_s16 = smov [#allocation7]   ;;  %s72_s20 = sshll.u32 %s2866_s5, 4  ;;  %s73_s20 = int_to_ptr.hbm [resolvable:$true] %s72_s20 }
   0x6   :  { %s45_s17 = sshll.u32 %s2536_s16, 4  ;;  %s2537_s21 = smov 192   ;;  %s46_s17 = int_to_ptr.vmem [resolvable:$true] %s45_s17 }
   0x7   :  { %s2538_s22 = smov 12   ;;  %s2539_s23 = smov [#allocation10]  }
   0x8   :  { %51 = dma.hbm_to_vmem [thread:$0]  %s44_s15, 3072, %s46_s17, [#allocation8], %s2537_s21, %s2537_s21, %s2538_s22  }
   0x9   :  { %s74_s24 = sshll.u32 %s2539_s23, 4  ;;  %s2127_s27 = sshll.u32 %s2861_s0, 8  ;;  %s75_s24 = int_to_ptr.vmem [resolvable:$true] %s74_s24 }
   0xa   :  { %s98_s16 = scalar_lea.hbm %s2869_s8, %s2127_s27  ;;  %s2540_s15 = smov [#allocation13]  }
   0xb   :  { %77 = dma.hbm_to_vmem [thread:$0]  %s73_s20, 16, %s75_s24, [#allocation11]  }
   0xc   :  { %s99_s5 = sshll.u32 %s98_s16, 4  ;;  %s101_s17 = sshll.u32 %s2540_s15, 4  ;;  %s100_s5 = int_to_ptr.hbm [resolvable:$true] %s99_s5  ;;  %s102_s17 = int_to_ptr.vmem [resolvable:$true] %s101_s17 }
   0xd   :  { %s30_s21 = sshll.u32 %s2862_s1, 4  ;;  %s2356_s22 = sshra.s32 %s100_s5, 4  ;;  %s2357_s22 = int_to_ptr.hbm [resolvable:$true] %s2356_s22  ;;  %s31_s21 = int_to_ptr.hbm [resolvable:$true] %s30_s21 }
   0xe   :  { %s2358_s23 = scalar_lea.hbm %s2357_s22, 256  ;;  %s2360_s2 = scalar_lea.hbm %s2869_s8, 768 }
   0xf   :  { %p2359_p0 = scmp.ne.s32.totalorder %s2357_s22, %s2358_s23  ;;  %p2361_p1 = scmp.lt.s32.totalorder %s2357_s22, %s2869_s8 }
  0x10   :  { %p2362_p2 = scmp.lt.s32.totalorder %s2360_s2, %s2358_s23 }
  0x12   :  { %p2363_p3 = por %p2362_p2, %p2361_p1 }
  0x14   :  { %p2364_p4 = pnand %p2363_p3, %p2359_p0 }
  0x16   :  { %2367 = shalt.err (!%p2364_p4)
}
  0x17   :  { %s2541_s20 = smov 256   ;;  %s2542_s24 = smov 16  }
  0x18   :  { %107 = dma.hbm_to_vmem [thread:$0]  %s100_s5, 4096, %s102_s17, [#allocation14], %s2541_s20, %s2541_s20, %s2542_s24  }
  0x19   :  { %s2543_s1 = smov [#allocation4]   ;;  %s2544_s16 = smov 128  }
  0x1a   :  { %s32_s30 = sshll.u32 %s2543_s1, 4  ;;  %s2545_s15 = smov 8   ;;  %s33_s30 = int_to_ptr.vmem [resolvable:$true] %s32_s30 }
  0x1b   :  { %38 = dma.hbm_to_vmem [thread:$0]  %s31_s21, 256, %s33_s30, [#allocation5], %s2544_s16, %s2544_s16, %s2545_s15  }
  0x1c   :  { %s58_s8 = sshll.u32 %s2865_s4, 4  ;;  %s2546_s22 = smov [#allocation9]   ;;  %s59_s8 = int_to_ptr.hbm [resolvable:$true] %s58_s8 }
  0x1d   :  { %s60_s23 = sshll.u32 %s2546_s22, 4  ;;  %s83_s17 = sshll.u32 %s2867_s6, 4  ;;  %s61_s23 = int_to_ptr.vmem [resolvable:$true] %s60_s23  ;;  %s84_s17 = int_to_ptr.hbm [resolvable:$true] %s83_s17 }
  0x1e   :  { %s2547_s26 = smov 64   ;;  %s2548_s2 = smov 4  }
  0x1f   :  { %66 = dma.hbm_to_vmem [thread:$0]  %s59_s8, 1024, %s61_s23, [#allocation8], %s2547_s26, %s2547_s26, %s2548_s2  }
  0x20   :  { %s2549_s21 = smov [#allocation12]   ;;  %s1724_s4 = sshll.u32 %s2861_s0, 2 }
  0x21   :  { %s85_s28 = sshll.u32 %s2549_s21, 4  ;;  %s114_s30 = scalar_lea.hbm %s2870_s9, %s1724_s4  ;;  %s86_s28 = int_to_ptr.vmem [resolvable:$true] %s85_s28 }
  0x22   :  { %88 = dma.hbm_to_vmem [thread:$0]  %s84_s17, 16, %s86_s28, [#allocation11]  }
  0x23   :  { %s116_s6 = sshll.u32 %s114_s30, 4  ;;  %s2550_s18 = smov [#allocation15]   ;;  %s117_s6 = int_to_ptr.hbm [resolvable:$true] %s116_s6 }
  0x24   :  { %s118_s19 = sshll.u32 %s2550_s18, 4  ;;  %s129_s5 = scalar_lea.hbm %s2871_s10, %s2127_s27  ;;  %s119_s19 = int_to_ptr.vmem [resolvable:$true] %s118_s19 }
  0x25   :  { %s2452_s21 = sshra.s32 %s117_s6, 4  ;;  %s2456_s17 = scalar_lea.hbm %s2870_s9, 12  ;;  %s2453_s21 = int_to_ptr.hbm [resolvable:$true] %s2452_s21 }
  0x26   :  { %s2454_s29 = scalar_lea.hbm %s2453_s21, 4  ;;  %p2457_p6 = scmp.lt.s32.totalorder %s2453_s21, %s2870_s9 }
  0x27   :  { %p2455_p5 = scmp.ne.s32.totalorder %s2453_s21, %s2454_s29  ;;  %p2458_p7 = scmp.lt.s32.totalorder %s2456_s17, %s2454_s29 }
  0x29   :  { %p2459_p8 = por %p2458_p7, %p2457_p6 }
  0x2b   :  { %p2460_p9 = pnand %p2459_p8, %p2455_p5 }
  0x2d   :  { %2463 = shalt.err (!%p2460_p9)
}
  0x2e   :  { %121 = dma.hbm_to_vmem [thread:$0]  %s117_s6, 64, %s119_s19, [#allocation14]  }
  0x2f   :  { %s130_s1 = sshll.u32 %s129_s5, 4  ;;  %s2551_s27 = smov [#allocation16]   ;;  %s131_s1 = int_to_ptr.hbm [resolvable:$true] %s130_s1 }
  0x30   :  { %s132_s30 = sshll.u32 %s2551_s27, 4  ;;  %s2476_s18 = sshra.s32 %s131_s1, 4  ;;  %s133_s30 = int_to_ptr.vmem [resolvable:$true] %s132_s30  ;;  %s2477_s18 = int_to_ptr.hbm [resolvable:$true] %s2476_s18 }
  0x31   :  { %s2478_s22 = scalar_lea.hbm %s2477_s18, 256  ;;  %s2480_s25 = scalar_lea.hbm %s2871_s10, 768 }
  0x32   :  { %p2479_p10 = scmp.ne.s32.totalorder %s2477_s18, %s2478_s22  ;;  %p2481_p11 = scmp.lt.s32.totalorder %s2477_s18, %s2871_s10 }
  0x33   :  { %p2482_p12 = scmp.lt.s32.totalorder %s2480_s25, %s2478_s22 }
  0x35   :  { %p2483_p13 = por %p2482_p12, %p2481_p11 }
  0x37   :  { %p2484_p0 = pnand %p2483_p13, %p2479_p10 }
  0x39   :  { %2487 = shalt.err (!%p2484_p0)
}
  0x3a   :  { %138 = dma.hbm_to_vmem [thread:$0]  %s131_s1, 4096, %s133_s30, [#allocation17], %s2547_s26, %s2547_s26, %s2548_s2  }
  0x3b   :  { %2524 = dma.done.wait [#allocation5], 256  }
  0x3c   :  { %2525 = vsyncadd [#allocation5], 4294967040 }
  0x3d   :  { %2526 = dma.done.wait [#allocation8], 4096  }
  0x3e   :  { %2527 = vsyncadd [#allocation8], 4294963200 }
  0x3f   :  { %2528 = dma.done.wait [#allocation11], 32  }
  0x40   :  { %2529 = vsyncadd [#allocation11], 4294967264 }
  0x41   :  { %2530 = dma.done.wait [#allocation14], 4160  }
  0x42   :  { %2531 = vsyncadd [#allocation14], 4294963136 }
  0x43   :  { %2532 = dma.done.wait [#allocation17], 4096  }
  0x44   :  { %2533 = vsyncadd [#allocation17], 4294963200  ;;  %v2150_v0 = vld [vmem:[#allocation7 + $0xac] sm:$0xf]  ;;  %v1815_v1 = vld [vmem:[#allocation7 + $0xb4] sm:$0xf0] }
  0x45   :  { %v1813_v2 = vld [vmem:[#allocation7 + $0xa8] sm:$0xf]  ;;  %v1818_v3 = vor.u32 %v2150_v0, %v1815_v1  ;;  %v2151_v4 = vld [vmem:[#allocation7 + $0xb0] sm:$0xf0]  ;;  %v1803_v6 = vld [vmem:[#allocation7 + $0x9c] sm:$0xf0] }
  0x46   :  { %v2147_v5 = vld [vmem:[#allocation7 + $0x94] sm:$0xf]  ;;  %v1814_v7 = vor.u32 %v2151_v4, %v1813_v2  ;;  %v1801_v8 = vld [vmem:[#allocation7 + $0x90] sm:$0xf]  ;;  %v2148_v9 = vld [vmem:[#allocation7 + $0x98] sm:$0xf0] }
  0x47   :  { %380 = vmatpush.bf16.msra.mxu1 %v1818_v3  ;;  %v1806_v10 = vor.u32 %v2147_v5, %v1803_v6  ;;  %v1802_v11 = vor.u32 %v2148_v9, %v1801_v8  ;;  %v2144_v12 = vld [vmem:[#allocation7 + $0x7c] sm:$0xf]  ;;  %v1791_v13 = vld [vmem:[#allocation7 + $0x84] sm:$0xf0]  ;;  %v1789_v14 = vld [vmem:[#allocation7 + $0x78] sm:$0xf] }
  0x48   :  { %366 = vmatpush.bf16.msra.mxu0 %v1814_v7  ;;  %v2145_v15 = vld [vmem:[#allocation7 + $0x80] sm:$0xf0]  ;;  %v1794_v16 = vor.u32 %v2144_v12, %v1791_v13  ;;  %v1779_v19 = vld [vmem:[#allocation7 + $0x6c] sm:$0xf0]  ;;  %v1777_v20 = vld [vmem:[#allocation7 + $0x60] sm:$0xf] }
  0x49   :  { %v1790_v17 = vor.u32 %v2145_v15, %v1789_v14  ;;  %v2141_v18 = vld [vmem:[#allocation7 + $0x64] sm:$0xf]  ;;  %v2142_v21 = vld [vmem:[#allocation7 + $0x68] sm:$0xf0]  ;;  %v1767_v24 = vld [vmem:[#allocation7 + $0x54] sm:$0xf0] }
  0x4a   :  { %v1782_v22 = vor.u32 %v2141_v18, %v1779_v19  ;;  %v2138_v23 = vld [vmem:[#allocation7 + $0x4c] sm:$0xf]  ;;  %v1778_v25 = vor.u32 %v2142_v21, %v1777_v20  ;;  %v1765_v26 = vld [vmem:[#allocation7 + $0x48] sm:$0xf]  ;;  %v2139_v27 = vld [vmem:[#allocation7 + $0x50] sm:$0xf0] }
  0x4b   :  { %381 = vmatpush.bf16.msra.mxu1 %v1806_v10  ;;  %v1770_v28 = vor.u32 %v2138_v23, %v1767_v24  ;;  %v1766_v29 = vor.u32 %v2139_v27, %v1765_v26  ;;  %v2135_v30 = vld [vmem:[#allocation7 + $0x34] sm:$0xf]  ;;  %v1755_v31 = vld [vmem:[#allocation7 + $0x3c] sm:$0xf0]  ;;  %v1753_v32 = vld [vmem:[#allocation7 + $0x30] sm:$0xf] }
  0x4c   :  { %367 = vmatpush.bf16.msra.mxu0 %v1802_v11  ;;  %v2136_v33 = vld [vmem:[#allocation7 + $0x38] sm:$0xf0]  ;;  %v1758_v34 = vor.u32 %v2135_v30, %v1755_v31  ;;  %v1743_v37 = vld [vmem:[#allocation7 + $0x24] sm:$0xf0]  ;;  %v1741_v38 = vld [vmem:[#allocation7 + $0x18] sm:$0xf] }
  0x4d   :  { %v1754_v35 = vor.u32 %v2136_v33, %v1753_v32  ;;  %v2132_v36 = vld [vmem:[#allocation7 + $0x1c] sm:$0xf]  ;;  %v2133_v39 = vld [vmem:[#allocation7 + $0x20] sm:$0xf0]  ;;  %v1731_v43 = vld [vmem:[#allocation7 + $0xc] sm:$0xf0] }
  0x4e   :  { %v1746_v40 = vor.u32 %v2132_v36, %v1743_v37  ;;  %v1742_v41 = vor.u32 %v2133_v39, %v1741_v38  ;;  %v2129_v42 = vld [vmem:[#allocation7 + $0x4] sm:$0xf]  ;;  %v1729_v44 = vld [vmem:[#allocation7] sm:$0xf]  ;;  %v2130_v45 = vld [vmem:[#allocation7 + $0x8] sm:$0xf0] }
  0x4f   :  { %382 = vmatpush.bf16.msra.mxu1 %v1794_v16  ;;  %v1734_v46 = vor.u32 %v2129_v42, %v1731_v43  ;;  %v2696_v47 = vld [vmem:[#allocation4] sm:$0xff]  ;;  %v2698_v48 = vld [vmem:[#allocation4 + $0x8] sm:$0xff]  ;;  %v1730_v49 = vor.u32 %v2130_v45, %v1729_v44  ;;  %vm414_vm0 = vcmask 261120   ;;  %v2149_v7 = vld [vmem:[#allocation7 + $0xa0] sm:$0xf0]  ;;  %s2553_s6 = smov 32  }
  0x50   :  { %368 = vmatpush.bf16.msra.mxu0 %v1790_v17  ;;  %v2702_v50 = vpack.c.bf16 %v2698_v48, %v2696_v47  ;;  %v2709_v51 = vld [vmem:[%s2864_s3] sm:$0x7]  ;;  %s2552_s3 = smov 96   ;;  %v2152_v3 = vld [vmem:[#allocation7 + $0xb8] sm:$0xf0]  ;;  %vm453_vm1 = vcmask 64512  }
  0x51   :  { %v233_v52 = vperm.slane %v2709_v51, 1  ;;  %v232_v53 = vperm.slane %v2709_v51, 0  ;;  %v1821_v2 = vld [vmem:[#allocation7 + $0xb0] sm:$0xf]  ;;  %v1809_v4 = vld [vmem:[#allocation7 + $0x98] sm:$0xf] }
  0x52   :  { %v1822_v6 = vor.u32 %v2152_v3, %v1821_v2  ;;  %v1810_v10 = vor.u32 %v2149_v7, %v1809_v4  ;;  %v1797_v13 = vld [vmem:[#allocation7 + $0x80] sm:$0xf]  ;;  %v2146_v14 = vld [vmem:[#allocation7 + $0x88] sm:$0xf0]  ;;  %v1785_v19 = vld [vmem:[#allocation7 + $0x68] sm:$0xf] }
  0x53   :  { %383 = vmatpush.bf16.msra.mxu1 %v1782_v22  ;;  %v1798_v18 = vor.u32 %v2146_v14, %v1797_v13  ;;  %v2143_v20 = vld [vmem:[#allocation7 + $0x70] sm:$0xf0]  ;;  %v1773_v23 = vld [vmem:[#allocation7 + $0x50] sm:$0xf]  ;;  %v2140_v24 = vld [vmem:[#allocation7 + $0x58] sm:$0xf0] }
  0x54   :  { %369 = vmatpush.bf16.msra.mxu0 %v1778_v25  ;;  %394 = vmatpush.bf16.msra.mxu2 %v1822_v6  ;;  %v1786_v22 = vor.u32 %v2143_v20, %v1785_v19  ;;  %v1774_v26 = vor.u32 %v2140_v24, %v1773_v23  ;;  %v1761_v27 = vld [vmem:[#allocation7 + $0x38] sm:$0xf]  ;;  %v1749_v30 = vld [vmem:[#allocation7 + $0x20] sm:$0xf]  ;;  %v2134_v31 = vld [vmem:[#allocation7 + $0x28] sm:$0xf0] }
  0x55   :  { %v1750_v32 = vor.u32 %v2134_v31, %v1749_v30  ;;  %v1737_v33 = vld [vmem:[#allocation7 + $0x8] sm:$0xf]  ;;  %vm481_vm2 = vcmask 1043456   ;;  %vm897_vm3 = vcmask 523264   ;;  %vm900_vm4 = vcmask 785408   ;;  %p190_p1 = scmp.lt.s32.totalorder %s2861_s0, 2 }
  0x56   :  { %s2555_s27 = smov [#allocation18]   ;;  %s1696_s22 = sshll.u32 %s2875_s14, 4  ;;  %s1697_s22 = int_to_ptr.hbm [resolvable:$true] %s1696_s22 }
  0x57   :  { %384 = vmatpush.bf16.msra.mxu1 %v1770_v28  ;;  %v2137_v28 = vld [vmem:[#allocation7 + $0x40] sm:$0xf0]  ;;  %s2877_s0 = smov (!%p190_p1, %s2861_s0), 2 }
  0x58   :  { %370 = vmatpush.bf16.msra.mxu0 %v1766_v29  ;;  %395 = vmatpush.bf16.msra.mxu2 %v1810_v10  ;;  %v1762_v29 = vor.u32 %v2137_v28, %v1761_v27  ;;  %s192_s28 = scalar_lea.vmem %s2872_s11, %s2877_s0 }
  0x5b   :  { %385 = vmatpush.bf16.msra.mxu1 %v1758_v34  ;;  %v2131_v34 = vld [vmem:[#allocation7 + $0x10] sm:$0xf0] }
  0x5c   :  { %371 = vmatpush.bf16.msra.mxu0 %v1754_v35  ;;  %396 = vmatpush.bf16.msra.mxu2 %v1798_v18  ;;  %v1738_v35 = vor.u32 %v2131_v34, %v1737_v33 }
  0x5f   :  { %386 = vmatpush.bf16.msra.mxu1 %v1746_v40 }
  0x60   :  { %372 = vmatpush.bf16.msra.mxu0 %v1742_v41  ;;  %397 = vmatpush.bf16.msra.mxu2 %v1786_v22 }
  0x63   :  { %387 = vmatpush.bf16.msra.mxu1 %v1734_v46 }
  0x64   :  { %373 = vmatpush.bf16.msra.mxu0 %v1730_v49  ;;  %398 = vmatpush.bf16.msra.mxu2 %v1774_v26 }
  0x66   :  { %388 = vmatmul.bf16.vlgmr.msra.gmra.mxu1 %v2702_v50 }
  0x67   :  { %374 = vmatmul.bf16.vlgmr.msra.gmra.mxu0 %v2702_v50 }
  0x68   :  { %399 = vmatpush.bf16.msra.mxu2 %v1762_v29 }
  0x6c   :  { %400 = vmatpush.bf16.msra.mxu2 %v1750_v32 }
  0x70   :  { %401 = vmatpush.bf16.msra.mxu2 %v1738_v35 }
  0x73   :  { %402 = vmatmul.bf16.vlgmr.msra.gmra.mxu2 %v2702_v50 }
  0xe3   :  { %v389_v54 = vpop.f32.mrf.mxu1 }
  0xe4   :  { %v390_v55 = vadd.f32 %v389_v54, %v233_v52  ;;  %v375_v56 = vpop.f32.mrf.mxu0 }
  0xe5   :  { %v376_v57 = vadd.f32 %v375_v56, %v232_v53 }
  0xe6   :  { %v410_v58 = vpack.c.bf16 %v390_v55, %v390_v55 }
  0xe7   :  { %v408_v61 = vpack.c.bf16 %v376_v57, %v376_v57 }
  0xe8   :  { %v523_v59 = vunpack.c.l.b16 %v410_v58  ;;  %v419_v60 = vsel %vm414_vm0, %v410_v58, 0 }
  0xe9   :  { %428 = vmatpush.bf16.xpose.msra.mxu3 %v419_v60  ;;  %v518_v5 = vunpack.c.l.b16 %v408_v61 }
  0xea   :  { %v524_v62 = vpack.c.b16 %v523_v59, %v523_v59 }
  0xeb   :  { %v391_v63 = vpop.f32.mrf.mxu1  ;;  %v519_v15 = vpack.c.b16 %v518_v5, %v518_v5 }
  0xec   :  { %v392_v0 = vadd.f32 %v391_v63, %v233_v52  ;;  %649 = vrot.lane.b32.xlu2 %v524_v62, %s2547_s26  ;;  %525 = vrot.lane.b32.xlu0 %v524_v62, %s2552_s3  ;;  %v377_v1 = vpop.f32.mrf.mxu0  ;;  %v234_v63 = vperm.slane %v2709_v51, 2 }
  0xed   :  { %v378_v9 = vadd.f32 %v377_v1, %v232_v53 }
  0xee   :  { %v411_v8 = vpack.c.bf16 %v392_v0, %v392_v0 }
  0xef   :  { %v409_v17 = vpack.c.bf16 %v378_v9, %v378_v9 }
  0xf0   :  { %v552_v11 = vunpack.c.l.b16 %v411_v8  ;;  %1823 = vmatmul.msk.bf16.vlgmr.msra.gmra.mxu3 %vm414_vm0, %v408_v61  ;;  %v438_v12 = vsel %vm414_vm0, %v411_v8, 0 }
  0xf1   :  { %447 = vmatpush.bf16.xpose.msrb.mxu3 %v438_v12  ;;  %v547_v21 = vunpack.c.l.b16 %v409_v17 }
  0xf2   :  { %v553_v16 = vpack.c.b16 %v552_v11, %v552_v11 }
  0xf3   :  { %v548_v25 = vpack.c.b16 %v547_v21, %v547_v21 }
  0xf4   :  { %554 = vrot.lane.b32.xlu1 %v553_v16, %s2552_s3  ;;  %672 = vrot.lane.b32.xlu2 %v553_v16, %s2547_s26 }
  0xf5   :  { %520 = vrot.lane.b32.xlu0 %v519_v15, %s2552_s3 }
  0xf6   :  { %v403_v0 = vpop.f32.mrf.mxu2 }
  0xf7   :  { %v404_v1 = vadd.f32 %v403_v0, %v234_v63 }
  0xf9   :  { %v412_v2 = vpack.c.bf16 %v404_v1, %v404_v1 }
  0xfb   :  { %v483_v3 = vsel %vm481_vm2, %v412_v2, 0  ;;  %v600_v4 = vunpack.c.l.b16 %v412_v2 }
  0xfc   :  { %761 = vrot.lane.b32.xlu2 %v524_v62, %s2553_s6  ;;  %549 = vrot.lane.b32.xlu1 %v548_v25, %s2552_s3 }
  0xfd   :  { %647 = vrot.lane.b32.xlu0 %v519_v15, %s2547_s26  ;;  %492 = vmatpush.bf16.msra.mxu3 %v483_v3  ;;  %v2746_v5 = vpack.c.b16 %v600_v4, %v600_v4 }
  0xfe   :  { %v405_v6 = vpop.f32.mrf.mxu2 }
  0xff   :  { %v406_v7 = vadd.f32 %v405_v6, %v234_v63 }
 0x100   :  { %1824 = vmatmul.msk.bf16.vlgmr.msrb.gmra.mxu3 %vm414_vm0, %v409_v17 }
 0x101   :  { %v413_v8 = vpack.c.bf16 %v406_v7, %v406_v7 }
 0x103   :  { %v502_v9 = vsel %vm481_vm2, %v413_v8, 0  ;;  %v624_v28 = vunpack.c.l.b16 %v413_v8 }
 0x104   :  { %782 = vrot.lane.b32.xlu2 %v548_v25, %s2553_s6  ;;  %670 = vrot.lane.b32.xlu1 %v548_v25, %s2547_s26 }
 0x105   :  { %784 = vrot.lane.b32.xlu0 %v553_v16, %s2553_s6  ;;  %511 = vmatpush.bf16.msrb.mxu0 %v502_v9  ;;  %v2756_v31 = vpack.c.b16 %v624_v28, %v624_v28 }
 0x10c   :  { %759 = vrot.lane.b32.xlu1 %v519_v15, %s2553_s6 }
 0x146   :  { %v650_v36 = vpop.permute.xlu2 %649 }
 0x147   :  { %v655_v37 = vsel %vm414_vm0, %v650_v36, 0 }
 0x148   :  { %664 = vmatpush.bf16.xpose.msrb.mxu1 %v655_v37 }
 0x14e   :  { %v673_v38 = vpop.permute.xlu2 %672 }
 0x14f   :  { %v678_v46 = vsel %vm414_vm0, %v673_v38, 0 }
 0x156   :  { %v762_v39 = vpop.permute.xlu2 %761 }
 0x157   :  { %v767_v40 = vsel %vm414_vm0, %v762_v39, 0 }
 0x158   :  { %776 = vmatpush.bf16.xpose.msra.mxu1 %v767_v40 }
 0x15e   :  { %v526_v41 = vpop.permute.xlu0 %525  ;;  %v783_v62 = vpop.permute.xlu2 %782 }
 0x15f   :  { %v531_v42 = vsel %vm414_vm0, %v526_v41, 0 }
 0x160   :  { %540 = vmatpush.bf16.xpose.msrb.mxu2 %v531_v42 }
 0x166   :  { %v555_v43 = vpop.permute.xlu1 %554 }
 0x167   :  { %v560_v44 = vsel %vm414_vm0, %v555_v43, 0  ;;  %v521_v45 = vpop.permute.xlu0 %520 }
 0x168   :  { %1827 = vmatmul.msk.bf16.vlgmr.msrb.gmra.mxu2 %vm414_vm0, %v521_v45 }
 0x169   :  { %569 = vmatpush.bf16.xpose.msra.mxu2 %v560_v44 }
 0x16e   :  { %v550_v49 = vpop.permute.xlu1 %549 }
 0x16f   :  { %v648_v50 = vpop.permute.xlu0 %647 }
 0x170   :  { %1831 = vmatmul.msk.bf16.vlgmr.msrb.gmra.mxu1 %vm414_vm0, %v648_v50 }
 0x171   :  { %687 = vmatpush.bf16.xpose.msrb.mxu2 %v678_v46 }
 0x173   :  { %v430_v52 = vpop.f32.mrf.mxu3 }
 0x174   :  { %v454_v53 = vsel %vm453_vm1, %v430_v52, -inf }
 0x175   :  { %455 = vmax.xlane.f32.xlu0 %v454_v53 }
 0x176   :  { %v671_v54 = vpop.permute.xlu1 %670 }
 0x177   :  { %v785_v55 = vpop.permute.xlu0 %784 }
 0x178   :  { %v790_v56 = vsel %vm414_vm0, %v785_v55, 0  ;;  %1828 = vmatmul.msk.bf16.vlgmr.msra.gmra.mxu2 %vm414_vm0, %v550_v49 }
 0x179   :  { %799 = vmatpush.bf16.xpose.msra.mxu2 %v790_v56 }
 0x17b   :  { %v432_v57 = vpop.f32.mrf.mxu3 }
 0x17e   :  { %v760_v58 = vpop.permute.xlu1 %759 }
 0x180   :  { %1835 = vmatmul.msk.bf16.vlgmr.msra.gmra.mxu1 %vm414_vm0, %v760_v58 }
 0x183   :  { %v449_v59 = vpop.f32.mrf.mxu3 }
 0x184   :  { %v457_v60 = vsel %vm453_vm1, %v449_v59, -inf }
 0x185   :  { %458 = vmax.xlane.f32.xlu1 %v457_v60 }
 0x188   :  { %1832 = vmatmul.msk.bf16.vlgmr.msrb.gmra.mxu2 %vm414_vm0, %v671_v54 }
 0x18b   :  { %v451_v61 = vpop.f32.mrf.mxu3 }
 0x198   :  { %1836 = vmatmul.msk.bf16.vlgmr.msra.gmra.mxu2 %vm414_vm0, %v783_v62 }
 0x19e   :  { %717 = vrot.lane.b32.xlu1 %v2746_v5, %s2547_s26 }
 0x1e8   :  { %v456_v51 = vpop.xlane.xlu0 %455 }
 0x1e9   :  { %v460_v10 = vsub.f32 %v430_v52, %v456_v51 }
 0x1eb   :  { %v462_v11 = vmul.f32 1.442695, %v460_v10  ;;  %v542_v12 = vpop.f32.mrf.mxu2 }
 0x1ec   :  { %v575_v13 = vsel %vm453_vm1, %v542_v12, -inf }
 0x1ed   :  { %2266 = vpow2.f32 %v462_v11  ;;  %576 = vmax.xlane.f32.xlu2 %v575_v13  ;;  %v666_v14 = vpop.f32.mrf.mxu1 }
 0x1ee   :  { %v693_v15 = vsel %vm453_vm1, %v666_v14, -inf }
 0x1ef   :  { %694 = vmax.xlane.f32.xlu0 %v693_v15 }
 0x1f3   :  { %v2267_v16 = vpop.eup %2266  ;;  %v544_v17 = vpop.f32.mrf.mxu2 }
 0x1f4   :  { %v466_v18 = vsel %vm453_vm1, %v2267_v16, 0.0 }
 0x1f5   :  { %v668_v19 = vpop.f32.mrf.mxu1 }
 0x1f7   :  { %467 = vadd.xlane.f32.xlu0 %v466_v18 }
 0x1f8   :  { %v459_v20 = vpop.xlane.xlu1 %458 }
 0x1f9   :  { %v461_v21 = vsub.f32 %v449_v59, %v459_v20 }
 0x1fb   :  { %v571_v22 = vpop.f32.mrf.mxu2  ;;  %v464_v25 = vmul.f32 1.442695, %v461_v21 }
 0x1fc   :  { %v578_v23 = vsel %vm453_vm1, %v571_v22, -inf }
 0x1fd   :  { %579 = vmax.xlane.f32.xlu2 %v578_v23  ;;  %v778_v24 = vpop.f32.mrf.mxu1  ;;  %2268 = vpow2.f32 %v464_v25 }
 0x1fe   :  { %v805_v27 = vsel %vm453_vm1, %v778_v24, -inf }
 0x203   :  { %v573_v26 = vpop.f32.mrf.mxu2  ;;  %v2269_v30 = vpop.eup %2268 }
 0x204   :  { %v469_v34 = vsel %vm453_vm1, %v2269_v30, 0.0 }
 0x205   :  { %806 = vmax.xlane.f32.xlu2 %v805_v27  ;;  %v780_v29 = vpop.f32.mrf.mxu1 }
 0x20b   :  { %v689_v32 = vpop.f32.mrf.mxu2  ;;  %626 = vrot.lane.b32.xlu0 %v2756_v31, %s2552_s3 }
 0x20c   :  { %v696_v33 = vsel %vm453_vm1, %v689_v32, -inf }
 0x20d   :  { %697 = vmax.xlane.f32.xlu1 %v696_v33  ;;  %470 = vadd.xlane.f32.xlu2 %v469_v34 }
 0x210   :  { %v718_v59 = vpop.permute.xlu1 %717 }
 0x211   :  { %v723_v13 = vsel %vm481_vm2, %v718_v59, 0 }
 0x213   :  { %v691_v35 = vpop.f32.mrf.mxu2 }
 0x21b   :  { %v2762_v36 = vpop.f32.mrf.mxu2 }
 0x21c   :  { %v808_v37 = vsel %vm453_vm1, %v2762_v36, -inf }
 0x21d   :  { %809 = vmax.xlane.f32.xlu1 %v808_v37 }
 0x223   :  { %v803_v38 = vpop.f32.mrf.mxu2 }
 0x225   :  { %602 = vrot.lane.b32.xlu2 %v2746_v5, %s2552_s3 }
 0x260   :  { %v577_v39 = vpop.xlane.xlu2 %576 }
 0x261   :  { %v581_v40 = vsub.f32 %v542_v12, %v577_v39 }
 0x262   :  { %v695_v41 = vpop.xlane.xlu0 %694 }
 0x263   :  { %v583_v42 = vmul.f32 1.442695, %v581_v40  ;;  %v699_v43 = vsub.f32 %v666_v14, %v695_v41 }
 0x265   :  { %2270 = vpow2.f32 %v583_v42  ;;  %v701_v44 = vmul.f32 1.442695, %v699_v43 }
 0x267   :  { %2272 = vpow2.f32 %v701_v44 }
 0x26a   :  { %v468_v45 = vpop.xlane.xlu0 %467 }
 0x26b   :  { %v2271_v46 = vpop.eup %2270  ;;  %2274 = vrcp.f32 %v468_v45 }
 0x26c   :  { %v587_v49 = vsel %vm453_vm1, %v2271_v46, 0.0 }
 0x26d   :  { %v2769_v50 = vpop.eup %2272  ;;  %588 = vadd.xlane.f32.xlu0 %v587_v49 }
 0x26e   :  { %v705_v52 = vsel %vm453_vm1, %v2769_v50, 0.0 }
 0x26f   :  { %706 = vadd.xlane.f32.xlu1 %v705_v52 }
 0x270   :  { %v580_v53 = vpop.xlane.xlu2 %579 }
 0x271   :  { %v2275_v54 = vpop.eup %2274  ;;  %v582_v55 = vsub.f32 %v571_v22, %v580_v53 }
 0x272   :  { %v474_v56 = vmul.f32 %v2275_v54, %v2267_v16 }
 0x273   :  { %v585_v57 = vmul.f32 1.442695, %v582_v55 }
 0x274   :  { %v476_v58 = vpack.c.bf16 %v474_v56, %v474_v56 }
 0x275   :  { %2276 = vpow2.f32 %v585_v57 }
 0x276   :  { %1825 = vmatmul.msk.bf16.vlgmr.msra.gmra.mxu3 %vm453_vm1, %v476_v58 }
 0x278   :  { %v807_v60 = vpop.xlane.xlu2 %806 }
 0x279   :  { %v811_v61 = vsub.f32 %v778_v24, %v807_v60 }
 0x27b   :  { %v2277_v62 = vpop.eup %2276  ;;  %v813_v63 = vmul.f32 1.442695, %v811_v61 }
 0x27c   :  { %v590_v0 = vsel %vm453_vm1, %v2277_v62, 0.0 }
 0x27d   :  { %2278 = vpow2.f32 %v813_v63  ;;  %v627_v1 = vpop.permute.xlu0 %626  ;;  %591 = vadd.xlane.f32.xlu1 %v590_v0 }
 0x27e   :  { %v632_v2 = vsel %vm481_vm2, %v627_v1, 0 }
 0x27f   :  { %641 = vmatpush.bf16.msra.mxu0 %v632_v2 }
 0x280   :  { %v471_v3 = vpop.xlane.xlu2 %470  ;;  %v698_v4 = vpop.xlane.xlu1 %697 }
 0x281   :  { %2280 = vrcp.f32 %v471_v3  ;;  %v700_v6 = vsub.f32 %v689_v32, %v698_v4  ;;  %738 = vrot.lane.b32.xlu0 %v2756_v31, %s2547_s26 }
 0x283   :  { %v2279_v7 = vpop.eup %2278  ;;  %v703_v8 = vmul.f32 1.442695, %v700_v6 }
 0x284   :  { %v817_v9 = vsel %vm453_vm1, %v2279_v7, 0.0 }
 0x285   :  { %2282 = vpow2.f32 %v703_v8  ;;  %818 = vadd.xlane.f32.xlu2 %v817_v9 }
 0x287   :  { %v2281_v51 = vpop.eup %2280 }
 0x288   :  { %v475_v10 = vmul.f32 %v2281_v51, %v2269_v30  ;;  %v603_v11 = vpop.permute.xlu2 %602  ;;  %v2160_v51 = vld [vmem:[#allocation9 + $0x38] sm:$0xff] }
 0x289   :  { %v608_v12 = vsel %vm481_vm2, %v603_v11, 0  ;;  %972 = vmatpush.bf16.msrb.mxu1 %v2160_v51  ;;  %v2158_v11 = vld [vmem:[#allocation9 + $0x28] sm:$0xff]  ;;  %v2188_v51 = vld [vmem:[#allocation13 + $0xd4] sm:$0xf0] }
 0x28a   :  { %617 = vmatpush.bf16.msrb.mxu3 %v608_v12  ;;  %v477_v14 = vpack.c.bf16 %v475_v10, %v475_v10  ;;  %v2159_v10 = vld [vmem:[#allocation9 + $0x30] sm:$0xff]  ;;  %v2157_v12 = vld [vmem:[#allocation9 + $0x20] sm:$0xff] }
 0x28b   :  { %v2283_v15 = vpop.eup %2282 }
 0x28c   :  { %1826 = vmatmul.msk.bf16.vlgmr.msrb.gmra.mxu0 %vm453_vm1, %v477_v14  ;;  %v708_v16 = vsel %vm453_vm1, %v2283_v15, 0.0  ;;  %v2155_v14 = vld [vmem:[#allocation9 + $0x10] sm:$0xff] }
 0x28d   :  { %709 = vadd.xlane.f32.xlu1 %v708_v16  ;;  %973 = vmatpush.bf16.msrb.mxu1 %v2159_v10  ;;  %v2153_v16 = vld [vmem:[#allocation9] sm:$0xff] }
 0x28e   :  { %732 = vmatpush.bf16.msra.mxu3 %v723_v13  ;;  %v2156_v13 = vld [vmem:[#allocation9 + $0x18] sm:$0xff] }
 0x290   :  { %v810_v17 = vpop.xlane.xlu1 %809 }
 0x291   :  { %v812_v18 = vsub.f32 %v2762_v36, %v810_v17  ;;  %974 = vmatpush.bf16.msrb.mxu1 %v2158_v11 }
 0x293   :  { %v815_v19 = vmul.f32 1.442695, %v812_v18 }
 0x295   :  { %2284 = vpow2.f32 %v815_v19  ;;  %975 = vmatpush.bf16.msrb.mxu1 %v2157_v12  ;;  %v2186_v12 = vld [vmem:[#allocation13 + $0xcc] sm:$0xf] }
 0x299   :  { %976 = vmatpush.bf16.msrb.mxu1 %v2156_v13  ;;  %v1979_v13 = vld [vmem:[#allocation13 + $0xd8] sm:$0xf0] }
 0x29b   :  { %v2285_v20 = vpop.eup %2284 }
 0x29c   :  { %v820_v21 = vsel %vm453_vm1, %v2285_v20, 0.0 }
 0x29d   :  { %977 = vmatpush.bf16.msrb.mxu1 %v2155_v14  ;;  %v1982_v14 = vor.u32 %v2186_v12, %v1979_v13  ;;  %v1899_v12 = vld [vmem:[#allocation13 + $0x38] sm:$0xf0]  ;;  %v1873_v13 = vld [vmem:[#allocation13] sm:$0xf] }
 0x2a6   :  { %829 = vrot.lane.b32.xlu1 %v2746_v5, %s2553_s6 }
 0x2ab   :  { %821 = vadd.xlane.f32.xlu0 %v820_v21 }
 0x2ae   :  { %850 = vrot.lane.b32.xlu1 %v2756_v31, %s2553_s6 }
 0x2e0   :  { %v589_v22 = vpop.xlane.xlu0 %588 }
 0x2e1   :  { %2286 = vrcp.f32 %v589_v22 }
 0x2e2   :  { %v707_v25 = vpop.xlane.xlu1 %706 }
 0x2e3   :  { %2288 = vrcp.f32 %v707_v25 }
 0x2e7   :  { %v2287_v23 = vpop.eup %2286 }
 0x2e8   :  { %v595_v24 = vmul.f32 %v2287_v23, %v2271_v46 }
 0x2e9   :  { %v2289_v28 = vpop.eup %2288 }
 0x2ea   :  { %v597_v26 = vpack.c.bf16 %v595_v24, %v595_v24  ;;  %v713_v30 = vmul.f32 %v2289_v28, %v2769_v50 }
 0x2ec   :  { %1829 = vmatmul.msk.bf16.vlgmr.msrb.gmra.mxu3 %vm453_vm1, %v597_v26  ;;  %v715_v34 = vpack.c.bf16 %v713_v30, %v713_v30 }
 0x2f0   :  { %v592_v27 = vpop.xlane.xlu1 %591 }
 0x2f1   :  { %2290 = vrcp.f32 %v592_v27 }
 0x2f3   :  { %v739_v5 = vpop.permute.xlu0 %738 }
 0x2f4   :  { %v744_v29 = vsel %vm481_vm2, %v739_v5, 0 }
 0x2f5   :  { %753 = vmatpush.bf16.msrb.mxu0 %v744_v29 }
 0x2f7   :  { %v2291_v32 = vpop.eup %2290 }
 0x2f8   :  { %v596_v31 = vmul.f32 %v2291_v32, %v2277_v62  ;;  %v819_v42 = vpop.xlane.xlu2 %818 }
 0x2f9   :  { %v2792_v33 = vpop.f32.mrf.mxu3 }
 0x2fa   :  { %v598_v35 = vpack.c.bf16 %v596_v31, %v596_v31  ;;  %v2260_v31 = vld [vmem:[#allocation10] ss:$0 sm:$0xff] }
 0x2fc   :  { %1830 = vmatmul.msk.bf16.vlgmr.msra.gmra.mxu0 %vm453_vm1, %v598_v35  ;;  %1833 = vmatmul.msk.bf16.vlgmr.msra.gmra.mxu3 %vm453_vm1, %v715_v34 }
 0x300   :  { %v710_v36 = vpop.xlane.xlu1 %709 }
 0x301   :  { %2292 = vrcp.f32 %v710_v36  ;;  %v496_v37 = vpop.f32.mrf.mxu3 }
 0x302   :  { %2294 = vrcp.f32 %v819_v42 }
 0x307   :  { %v2293_v38 = vpop.eup %2292 }
 0x308   :  { %v714_v39 = vmul.f32 %v2293_v38, %v2283_v15  ;;  %v2295_v44 = vpop.eup %2294  ;;  %v2154_v15 = vld [vmem:[#allocation9 + $0x8] sm:$0xff] }
 0x309   :  { %v513_v40 = vpop.f32.mrf.mxu0  ;;  %v825_v45 = vmul.f32 %v2295_v44, %v2279_v7  ;;  %978 = vmatpush.bf16.msrb.mxu1 %v2154_v15  ;;  %v1953_v15 = vld [vmem:[#allocation13 + $0xa0] sm:$0xf] }
 0x30a   :  { %v716_v41 = vpack.c.bf16 %v714_v39, %v714_v39  ;;  %v2554_v39 = vmov 128.0  }
 0x30b   :  { %v827_v50 = vpack.c.bf16 %v825_v45, %v825_v45 }
 0x30c   :  { %1834 = vmatmul.msk.bf16.vlgmr.msrb.gmra.mxu0 %vm453_vm1, %v716_v41 }
 0x30d   :  { %979 = vmatpush.bf16.msrb.mxu1 %v2153_v16  ;;  %v2183_v16 = vld [vmem:[#allocation13 + $0xac] sm:$0xf0] }
 0x311   :  { %v515_v43 = vpop.f32.mrf.mxu0 }
 0x318   :  { %v830_v46 = vpop.permute.xlu1 %829 }
 0x319   :  { %v835_v49 = vsel %vm481_vm2, %v830_v46, 0 }
 0x31a   :  { %844 = vmatpush.bf16.msrb.mxu3 %v835_v49 }
 0x31d   :  { %1837 = vmatmul.msk.bf16.vlgmr.msrb.gmra.mxu3 %vm453_vm1, %v827_v50 }
 0x31e   :  { %v822_v52 = vpop.xlane.xlu0 %821 }
 0x31f   :  { %2296 = vrcp.f32 %v822_v52 }
 0x320   :  { %v851_v53 = vpop.permute.xlu1 %850  ;;  %2298 = vrcp.f32 %v2554_v39  ;;  %v2175_v39 = vld [vmem:[#allocation13 + $0x6c] sm:$0xf0] }
 0x321   :  { %v856_v54 = vsel %vm481_vm2, %v851_v53, 0 }
 0x322   :  { %865 = vmatpush.bf16.msra.mxu0 %v856_v54 }
 0x325   :  { %v2297_v55 = vpop.eup %2296 }
 0x326   :  { %v826_v56 = vmul.f32 %v2297_v55, %v2285_v20  ;;  %v1985_v55 = vld [vmem:[#allocation13 + $0xe0] sm:$0xf] }
 0x328   :  { %v828_v57 = vpack.c.bf16 %v826_v56, %v826_v56  ;;  %v2191_v56 = vld [vmem:[#allocation13 + $0xec] sm:$0xf0] }
 0x32a   :  { %1838 = vmatmul.msk.bf16.vlgmr.msra.gmra.mxu0 %vm453_vm1, %v828_v57  ;;  %v2189_v57 = vld [vmem:[#allocation13 + $0xe4] sm:$0xf] }
 0x36f   :  { %v619_v58 = vpop.f32.mrf.mxu3 }
 0x377   :  { %v621_v59 = vpop.f32.mrf.mxu3 }
 0x378   :  { %v1987_v59 = vld [vmem:[#allocation13 + $0xf0] sm:$0xf0] }
 0x379   :  { %v643_v60 = vpop.f32.mrf.mxu0 }
 0x37a   :  { %v2245_v61 = vpack.i.bf16 %v643_v60, %v619_v58  ;;  %v1986_v58 = vor.u32 %v2191_v56, %v1985_v55  ;;  %v1993_v60 = vld [vmem:[#allocation13 + $0xe8] sm:$0xf]  ;;  %v2171_v55 = vld [vmem:[#allocation13 + $0x4c] sm:$0xf0]  ;;  %v2169_v56 = vld [vmem:[#allocation13 + $0x44] sm:$0xf] }
 0x37c   :  { %2246 = vrot.lane.b32.xlu1 %v2245_v61, %s2553_s6  ;;  %v2192_v61 = vld [vmem:[#allocation13 + $0xf4] sm:$0xf0]  ;;  %1250 = vmatpush.bf16.msrb.mxu2 %v1986_v58  ;;  %v1907_v58 = vld [vmem:[#allocation13 + $0x50] sm:$0xf0] }
 0x37f   :  { %v734_v62 = vpop.f32.mrf.mxu3 }
 0x381   :  { %v645_v63 = vpop.f32.mrf.mxu0 }
 0x382   :  { %v1994_v63 = vor.u32 %v2192_v61, %v1993_v60  ;;  %v2172_v60 = vld [vmem:[#allocation13 + $0x54] sm:$0xf0]  ;;  %v1910_v61 = vor.u32 %v2169_v56, %v1907_v58 }
 0x384   :  { %1278 = vmatpush.bf16.msrb.mxu0 %v1994_v63  ;;  %v2170_v63 = vld [vmem:[#allocation13 + $0x4c] sm:$0xf] }
 0x387   :  { %v736_v0 = vpop.f32.mrf.mxu3 }
 0x388   :  { %v2190_v0 = vld [vmem:[#allocation13 + $0xec] sm:$0xf] }
 0x389   :  { %v755_v1 = vpop.f32.mrf.mxu0 }
 0x38a   :  { %v2250_v2 = vpack.i.bf16 %v755_v1, %v734_v62  ;;  %v1990_v62 = vor.u32 %v2189_v57, %v1987_v59  ;;  %v1995_v1 = vld [vmem:[#allocation13 + $0xf8] sm:$0xf0]  ;;  %v1913_v59 = vld [vmem:[#allocation13 + $0x48] sm:$0xf] }
 0x38c   :  { %2251 = vrot.lane.b32.xlu2 %v2250_v2, %s2547_s26  ;;  %v1998_v2 = vor.u32 %v2190_v0, %v1995_v1  ;;  %1264 = vmatpush.bf16.msra.mxu3 %v1990_v62  ;;  %v1914_v62 = vor.u32 %v2172_v60, %v1913_v59  ;;  %v1915_v0 = vld [vmem:[#allocation13 + $0x58] sm:$0xf0] }
 0x38d   :  { %v1918_v1 = vor.u32 %v2170_v63, %v1915_v0 }
 0x38e   :  { %1292 = vmatpush.bf16.msra.mxu1 %v1998_v2  ;;  %v1889_v2 = vld [vmem:[#allocation13 + $0x20] sm:$0xf] }
 0x391   :  { %v757_v3 = vpop.f32.mrf.mxu0 }
 0x392   :  { %v1969_v3 = vld [vmem:[#allocation13 + $0xc0] sm:$0xf]  ;;  %1293 = vmatpush.bf16.msra.mxu1 %v1982_v14 }
 0x3a0   :  { %v846_v4 = vpop.f32.mrf.mxu3 }
 0x3a7   :  { %v867_v6 = vpop.f32.mrf.mxu0 }
 0x3a8   :  { %v2255_v7 = vpack.i.bf16 %v867_v6, %v846_v4  ;;  %v848_v8 = vpop.f32.mrf.mxu3  ;;  %v2187_v4 = vld [vmem:[#allocation13 + $0xcc] sm:$0xf0]  ;;  %v2185_v6 = vld [vmem:[#allocation13 + $0xc4] sm:$0xf] }
 0x3a9   :  { %v1971_v8 = vld [vmem:[#allocation13 + $0xd0] sm:$0xf0] }
 0x3aa   :  { %2256 = vrot.lane.b32.xlu1 %v2255_v7, %s2552_s3  ;;  %v1970_v7 = vor.u32 %v2187_v4, %v1969_v3  ;;  %v1974_v10 = vor.u32 %v2185_v6, %v1971_v8  ;;  %v2167_v3 = vld [vmem:[#allocation13 + $0x2c] sm:$0xf0]  ;;  %v2165_v4 = vld [vmem:[#allocation13 + $0x24] sm:$0xf]  ;;  %v1897_v8 = vld [vmem:[#allocation13 + $0x28] sm:$0xf] }
 0x3ab   :  { %v1890_v6 = vor.u32 %v2167_v3, %v1889_v2  ;;  %v2262_v3 = vld [vmem:[%s2868_s7] ss:$0 sm:$0xff] }
 0x3ac   :  { %1251 = vmatpush.bf16.msrb.mxu2 %v1970_v7  ;;  %1265 = vmatpush.bf16.msra.mxu3 %v1974_v10  ;;  %v1891_v7 = vld [vmem:[#allocation13 + $0x30] sm:$0xf0] }
 0x3af   :  { %v869_v9 = vpop.f32.mrf.mxu0 }
 0x3b0   :  { %v1977_v9 = vld [vmem:[#allocation13 + $0xc8] sm:$0xf] }
 0x3b1   :  { %v1978_v11 = vor.u32 %v2188_v51, %v1977_v9  ;;  %v2168_v9 = vld [vmem:[#allocation13 + $0x34] sm:$0xf0]  ;;  %v1894_v51 = vor.u32 %v2165_v4, %v1891_v7 }
 0x3b2   :  { %v1898_v10 = vor.u32 %v2168_v9, %v1897_v8  ;;  %v2212_v8 = vld [vmem:[#allocation16 + $0x98] sm:$0xff] }
 0x3b3   :  { %1279 = vmatpush.bf16.msrb.mxu0 %v1978_v11  ;;  %v2166_v11 = vld [vmem:[#allocation13 + $0x2c] sm:$0xf]  ;;  %v2220_v9 = vld [vmem:[#allocation16 + $0xd8] sm:$0xff] }
 0x3e6   :  { %v2252_v20 = vpop.permute.xlu2 %2251 }
 0x3e7   :  { %v2254_v23 = vunpack.i.h.bf16 %v2252_v20  ;;  %v2253_v24 = vunpack.i.l.bf16 %v2252_v20  ;;  %v1961_v20 = vld [vmem:[#allocation13 + $0xa8] sm:$0xf] }
 0x3ee   :  { %v2247_v17 = vpop.permute.xlu1 %2246 }
 0x3ef   :  { %v2249_v18 = vunpack.i.h.bf16 %v2247_v17  ;;  %v2248_v19 = vunpack.i.l.bf16 %v2247_v17  ;;  %v2181_v17 = vld [vmem:[#allocation13 + $0xa4] sm:$0xf] }
 0x3f1   :  { %v896_v21 = vsel %vm414_vm0, %v513_v40, %v2249_v18  ;;  %v895_v22 = vsel %vm414_vm0, %v2792_v33, %v2248_v19  ;;  %v2299_v40 = vpop.eup %2298  ;;  %v1954_v18 = vor.u32 %v2183_v16, %v1953_v15  ;;  %v1955_v19 = vld [vmem:[#allocation13 + $0xb0] sm:$0xf0]  ;;  %v1902_v15 = vor.u32 %v2166_v11, %v1899_v12  ;;  %v2163_v16 = vld [vmem:[#allocation13 + $0xc] sm:$0xf0]  ;;  %v2196_v12 = vld [vmem:[#allocation16 + $0x18] sm:$0xff] }
 0x3f2   :  { %v898_v28 = vsel %vm897_vm3, %v895_v22, %v2253_v24  ;;  %v899_v5 = vsel %vm897_vm3, %v896_v21, %v2254_v23  ;;  %v995_v41 = vmul.f32 128.0, %v2299_v40  ;;  %vm999_vm5 = vweird.f32 %v2299_v40  ;;  %v2184_v21 = vld [vmem:[#allocation13 + $0xb4] sm:$0xf0]  ;;  %v2182_v24 = vld [vmem:[#allocation13 + $0xac] sm:$0xf] }
 0x3f3   :  { %v1958_v22 = vor.u32 %v2181_v17, %v1955_v19  ;;  %v1962_v23 = vor.u32 %v2184_v21, %v1961_v20  ;;  %1252 = vmatpush.bf16.msrb.mxu2 %v1954_v18  ;;  %v2161_v17 = vld [vmem:[#allocation13 + $0x4] sm:$0xf]  ;;  %v1875_v18 = vld [vmem:[#allocation13 + $0x10] sm:$0xf0]  ;;  %v1874_v20 = vor.u32 %v2163_v16, %v1873_v13  ;;  %v2204_v13 = vld [vmem:[#allocation16 + $0x58] sm:$0xff] }
 0x3f4   :  { %v996_v42 = vsub.f32 1.0, %v995_v41  ;;  %v1878_v21 = vor.u32 %v2161_v17, %v1875_v18  ;;  %v2219_v11 = vld [vmem:[#allocation16 + $0xd0] sm:$0xff]  ;;  %v2209_v18 = vld [vmem:[#allocation16 + $0x80] sm:$0xff] }
 0x3f5   :  { %1266 = vmatpush.bf16.msra.mxu3 %v1958_v22  ;;  %1280 = vmatpush.bf16.msrb.mxu0 %v1962_v23  ;;  %v1881_v22 = vld [vmem:[#allocation13 + $0x8] sm:$0xf]  ;;  %v2164_v23 = vld [vmem:[#allocation13 + $0x14] sm:$0xf0] }
 0x3f6   :  { %v997_v43 = vmul.f32 %v2299_v40, %v996_v42  ;;  %v1923_v42 = vld [vmem:[#allocation13 + $0x70] sm:$0xf0] }
 0x3f7   :  { %v2195_v16 = vld [vmem:[#allocation16 + $0x10] sm:$0xff] }
 0x3f8   :  { %v998_v44 = vadd.f32 %v2299_v40, %v997_v43  ;;  %v1929_v43 = vld [vmem:[#allocation13 + $0x68] sm:$0xf]  ;;  %v2203_v17 = vld [vmem:[#allocation16 + $0x50] sm:$0xff] }
 0x3fa   :  { %v2809_v45 = vsel %vm999_vm5, %v2299_v40, %v998_v44  ;;  %v2173_v40 = vld [vmem:[#allocation13 + $0x64] sm:$0xf]  ;;  %v2176_v44 = vld [vmem:[#allocation13 + $0x74] sm:$0xf0] }
 0x41c   :  { %v2257_v25 = vpop.permute.xlu1 %2256 }
 0x41d   :  { %v2259_v26 = vunpack.i.h.bf16 %v2257_v25  ;;  %v2258_v27 = vunpack.i.l.bf16 %v2257_v25  ;;  %v1963_v25 = vld [vmem:[#allocation13 + $0xb8] sm:$0xf0] }
 0x41f   :  { %v902_v29 = vsel %vm900_vm4, %v899_v5, %v2259_v26  ;;  %v901_v30 = vsel %vm900_vm4, %v898_v28, %v2258_v27  ;;  %v1966_v26 = vor.u32 %v2182_v24, %v1963_v25  ;;  %v1937_v27 = vld [vmem:[#allocation13 + $0x80] sm:$0xf]  ;;  %v2179_v28 = vld [vmem:[#allocation13 + $0x8c] sm:$0xf0]  ;;  %v2177_v5 = vld [vmem:[#allocation13 + $0x84] sm:$0xf]  ;;  %v1882_v25 = vor.u32 %v2164_v23, %v1881_v22 }
 0x420   :  { %v903_v32 = vpack.c.bf16 %v902_v29, %v901_v30  ;;  %v1938_v29 = vor.u32 %v2179_v28, %v1937_v27  ;;  %v1939_v30 = vld [vmem:[#allocation13 + $0x90] sm:$0xf0]  ;;  %v2162_v24 = vld [vmem:[#allocation13 + $0xc] sm:$0xf]  ;;  %v2193_v22 = vld [vmem:[#allocation16] sm:$0xff] }
 0x421   :  { %1294 = vmatpush.bf16.msra.mxu1 %v1966_v26  ;;  %v1883_v26 = vld [vmem:[#allocation13 + $0x18] sm:$0xf0]  ;;  %v2201_v23 = vld [vmem:[#allocation16 + $0x40] sm:$0xff] }
 0x422   :  { %980 = vmatmul.bf16.vlgmr.msrb.gmra.mxu1 %v903_v32  ;;  %v1945_v32 = vld [vmem:[#allocation13 + $0x88] sm:$0xf]  ;;  %1253 = vmatpush.bf16.msrb.mxu2 %v1938_v29  ;;  %v1886_v28 = vor.u32 %v2162_v24, %v1883_v26  ;;  %v2216_v29 = vld [vmem:[#allocation16 + $0xb8] sm:$0xff] }
 0x423   :  { %v1080_v24 = vld [vmem:[#allocation15] sm:$0xf] }
 0x49f   :  { %v981_v34 = vpop.f32.mrf.mxu1 }
 0x4a0   :  { %v982_v35 = vadd.f32 %v2260_v31, %v981_v34  ;;  %v1942_v34 = vor.u32 %v2177_v5, %v1939_v30  ;;  %v2224_v30 = vld [vmem:[#allocation16 + $0xf8] sm:$0xff] }
 0x4a2   :  { %v986_v36 = vadd.f32 %v982_v35, %v2696_v47  ;;  %1267 = vmatpush.bf16.msra.mxu3 %v1942_v34  ;;  %v2208_v34 = vld [vmem:[#allocation16 + $0x78] sm:$0xff] }
 0x4a4   :  { %990 = vadd.xlane.f32.xlu0 %v986_v36 }
 0x4a7   :  { %v983_v33 = vpop.f32.mrf.mxu1 }
 0x4a8   :  { %v984_v37 = vadd.f32 %v2260_v31, %v983_v33  ;;  %v2180_v31 = vld [vmem:[#allocation13 + $0x94] sm:$0xf0]  ;;  %v1947_v33 = vld [vmem:[#allocation13 + $0x98] sm:$0xf0] }
 0x4a9   :  { %v1946_v35 = vor.u32 %v2180_v31, %v1945_v32  ;;  %v2200_v31 = vld [vmem:[#allocation16 + $0x38] sm:$0xff] }
 0x4aa   :  { %v987_v38 = vadd.f32 %v984_v37, %v2698_v48 }
 0x4ab   :  { %1281 = vmatpush.bf16.msrb.mxu0 %v1946_v35  ;;  %v2215_v35 = vld [vmem:[#allocation16 + $0xb0] sm:$0xff] }
 0x4ac   :  { %992 = vadd.xlane.f32.xlu1 %v987_v38 }
 0x517   :  { %v991_v46 = vpop.xlane.xlu0 %990 }
 0x518   :  { %v1001_v49 = vmul.f32 %v2809_v45, %v991_v46  ;;  %v1926_v46 = vor.u32 %v2173_v40, %v1923_v42  ;;  %v2214_v42 = vld [vmem:[#allocation16 + $0xa8] sm:$0xff] }
 0x51a   :  { %v2812_v47 = vsub.f32 %v986_v36, %v1001_v49  ;;  %v2178_v36 = vld [vmem:[#allocation13 + $0x8c] sm:$0xf]  ;;  %v1930_v49 = vor.u32 %v2176_v44, %v1929_v43  ;;  %1268 = vmatpush.bf16.msra.mxu3 %v1926_v46 }
 0x51b   :  { %v1950_v37 = vor.u32 %v2178_v36, %v1947_v33  ;;  %v2223_v36 = vld [vmem:[#allocation16 + $0xf0] sm:$0xff]  ;;  %v2222_v43 = vld [vmem:[#allocation16 + $0xe8] sm:$0xff] }
 0x51c   :  { %v1005_v50 = vmul.f32 %v2812_v47, %v2812_v47  ;;  %1282 = vmatpush.bf16.msrb.mxu0 %v1930_v49  ;;  %v2198_v44 = vld [vmem:[#allocation16 + $0x28] sm:$0xff] }
 0x51d   :  { %1295 = vmatpush.bf16.msra.mxu1 %v1950_v37  ;;  %v2206_v46 = vld [vmem:[#allocation16 + $0x68] sm:$0xff] }
 0x51e   :  { %1007 = vadd.xlane.f32.xlu0 %v1005_v50  ;;  %v2174_v50 = vld [vmem:[#allocation13 + $0x6c] sm:$0xf]  ;;  %1269 = vmatpush.bf16.msra.mxu3 %v1910_v61 }
 0x51f   :  { %v993_v48 = vpop.xlane.xlu1 %992 }
 0x520   :  { %v1002_v52 = vmul.f32 %v2809_v45, %v993_v48  ;;  %v1931_v48 = vld [vmem:[#allocation13 + $0x78] sm:$0xf0]  ;;  %1283 = vmatpush.bf16.msrb.mxu0 %v1914_v62 }
 0x521   :  { %v2261_v62 = vld [vmem:[#allocation12] ss:$0 sm:$0xff] }
 0x522   :  { %v2817_v53 = vsub.f32 %v987_v38, %v1002_v52  ;;  %v1921_v38 = vld [vmem:[#allocation13 + $0x60] sm:$0xf]  ;;  %v1934_v52 = vor.u32 %v2174_v50, %v1931_v48  ;;  %1270 = vmatpush.bf16.msra.mxu3 %v1894_v51  ;;  %v2213_v48 = vld [vmem:[#allocation16 + $0xa0] sm:$0xff] }
 0x523   :  { %v1922_v41 = vor.u32 %v2175_v39, %v1921_v38  ;;  %v2199_v38 = vld [vmem:[#allocation16 + $0x30] sm:$0xff]  ;;  %v2205_v51 = vld [vmem:[#allocation16 + $0x60] sm:$0xff] }
 0x524   :  { %v1006_v54 = vmul.f32 %v2817_v53, %v2817_v53  ;;  %1296 = vmatpush.bf16.msra.mxu1 %v1934_v52  ;;  %1284 = vmatpush.bf16.msrb.mxu0 %v1898_v10  ;;  %v2207_v39 = vld [vmem:[#allocation16 + $0x70] sm:$0xff]  ;;  %v2221_v52 = vld [vmem:[#allocation16 + $0xe0] sm:$0xff] }
 0x525   :  { %1254 = vmatpush.bf16.msrb.mxu2 %v1922_v41  ;;  %v2211_v10 = vld [vmem:[#allocation16 + $0x90] sm:$0xff] }
 0x526   :  { %1009 = vadd.xlane.f32.xlu0 %v1006_v54  ;;  %v1905_v54 = vld [vmem:[#allocation13 + $0x40] sm:$0xf]  ;;  %1271 = vmatpush.bf16.msra.mxu3 %v1878_v21  ;;  %v2202_v21 = vld [vmem:[#allocation16 + $0x48] sm:$0xff] }
 0x527   :  { %v1906_v57 = vor.u32 %v2171_v55, %v1905_v54 }
 0x528   :  { %1297 = vmatpush.bf16.msra.mxu1 %v1918_v1  ;;  %1285 = vmatpush.bf16.msrb.mxu0 %v1882_v25 }
 0x529   :  { %1255 = vmatpush.bf16.msrb.mxu2 %v1906_v57 }
 0x52a   :  { %1592 = vmatpush.bf16.msrb.mxu3 %v2208_v34  ;;  %v1083_v34 = vperm.slane %v1080_v24, 1 }
 0x52c   :  { %1298 = vmatpush.bf16.msra.mxu1 %v1902_v15  ;;  %1606 = vmatpush.bf16.msra.mxu0 %v2216_v29  ;;  %v2218_v15 = vld [vmem:[#allocation16 + $0xc8] sm:$0xff] }
 0x52d   :  { %1256 = vmatpush.bf16.msrb.mxu2 %v1890_v6 }
 0x52e   :  { %1593 = vmatpush.bf16.msrb.mxu3 %v2207_v39 }
 0x530   :  { %1299 = vmatpush.bf16.msra.mxu1 %v1886_v28  ;;  %1607 = vmatpush.bf16.msra.mxu0 %v2215_v35  ;;  %v1085_v28 = vperm.slane %v1080_v24, 3 }
 0x531   :  { %1257 = vmatpush.bf16.msrb.mxu2 %v1874_v20  ;;  %v2194_v20 = vld [vmem:[#allocation16 + $0x8] sm:$0xff] }
 0x532   :  { %1594 = vmatpush.bf16.msrb.mxu3 %v2206_v46 }
 0x534   :  { %1620 = vmatpush.bf16.msrb.mxu1 %v2224_v30  ;;  %1608 = vmatpush.bf16.msra.mxu0 %v2214_v42 }
 0x535   :  { %1578 = vmatpush.bf16.msra.mxu2 %v2200_v31  ;;  %v1082_v31 = vperm.slane %v1080_v24, 0 }
 0x536   :  { %1595 = vmatpush.bf16.msrb.mxu3 %v2205_v51 }
 0x538   :  { %1621 = vmatpush.bf16.msrb.mxu1 %v2223_v36  ;;  %1609 = vmatpush.bf16.msra.mxu0 %v2213_v48 }
 0x539   :  { %1579 = vmatpush.bf16.msra.mxu2 %v2199_v38 }
 0x53a   :  { %1596 = vmatpush.bf16.msrb.mxu3 %v2204_v13 }
 0x53c   :  { %1622 = vmatpush.bf16.msrb.mxu1 %v2222_v43  ;;  %1610 = vmatpush.bf16.msra.mxu0 %v2212_v8 }
 0x53d   :  { %1580 = vmatpush.bf16.msra.mxu2 %v2198_v44 }
 0x53e   :  { %1597 = vmatpush.bf16.msrb.mxu3 %v2203_v17 }
 0x540   :  { %1623 = vmatpush.bf16.msrb.mxu1 %v2221_v52  ;;  %1611 = vmatpush.bf16.msra.mxu0 %v2211_v10 }
 0x542   :  { %1598 = vmatpush.bf16.msrb.mxu3 %v2202_v21 }
 0x544   :  { %1624 = vmatpush.bf16.msrb.mxu1 %v2220_v9 }
 0x546   :  { %1599 = vmatpush.bf16.msrb.mxu3 %v2201_v23 }
 0x548   :  { %1625 = vmatpush.bf16.msrb.mxu1 %v2219_v11 }
 0x54c   :  { %1626 = vmatpush.bf16.msrb.mxu1 %v2218_v15 }
 0x591   :  { %v1008_v14 = vpop.xlane.xlu0 %1007 }
 0x592   :  { %v1011_v19 = vmul.f32 %v1008_v14, %v2809_v45  ;;  %v2210_v14 = vld [vmem:[#allocation16 + $0x88] sm:$0xff] }
 0x593   :  { %1612 = vmatpush.bf16.msra.mxu0 %v2210_v14 }
 0x594   :  { %v1013_v27 = vadd.f32 1e-05, %v1011_v19  ;;  %v2217_v19 = vld [vmem:[#allocation16 + $0xc0] sm:$0xff] }
 0x595   :  { %1627 = vmatpush.bf16.msrb.mxu1 %v2217_v19 }
 0x596   :  { %2300 = vrsqrt.f32 %v1013_v27  ;;  %vm1021_vm7 = vweird.f32 %v1013_v27 }
 0x597   :  { %1613 = vmatpush.bf16.msra.mxu0 %v2209_v18 }
 0x599   :  { %v1010_v5 = vpop.xlane.xlu0 %1009 }
 0x59a   :  { %v1012_v32 = vmul.f32 %v1010_v5, %v2809_v45 }
 0x59c   :  { %v2301_v33 = vpop.eup %2300  ;;  %v1014_v37 = vadd.f32 1e-05, %v1012_v32 }
 0x59d   :  { %v1016_v40 = vmul.f32 %v2301_v33, %v1013_v27  ;;  %vm1022_vm6 = vweird.f32 %v2301_v33  ;;  %v1084_v27 = vperm.slane %v1080_v24, 2 }
 0x59e   :  { %2302 = vrsqrt.f32 %v1014_v37  ;;  %vm1023_vm8 = vmor %vm1021_vm7, %vm1022_vm6  ;;  %vm1031_vm10 = vweird.f32 %v1014_v37 }
 0x59f   :  { %v1017_v41 = vmul.f32 %v2301_v33, %v1016_v40 }
 0x5a1   :  { %v1018_v49 = vmul.f32 0.5, %v1017_v41 }
 0x5a3   :  { %v1019_v50 = vsub.f32 1.5, %v1018_v49 }
 0x5a4   :  { %v2303_v54 = vpop.eup %2302 }
 0x5a5   :  { %v1020_v55 = vmul.f32 %v2301_v33, %v1019_v50  ;;  %v1026_v56 = vmul.f32 %v2303_v54, %v1014_v37  ;;  %vm1032_vm9 = vweird.f32 %v2303_v54 }
 0x5a6   :  { %vm1033_vm11 = vmor %vm1031_vm10, %vm1032_vm9 }
 0x5a7   :  { %v1027_v57 = vmul.f32 %v2303_v54, %v1026_v56  ;;  %v1024_v58 = vsel %vm1023_vm8, %v2301_v33, %v1020_v55 }
 0x5a8   :  { %v1035_v61 = vmul.f32 %v1024_v58, %v2812_v47 }
 0x5a9   :  { %v1028_v59 = vmul.f32 0.5, %v1027_v57 }
 0x5aa   :  { %v1040_v2 = vmul.f32 %v2261_v62, %v1035_v61 }
 0x5ab   :  { %v1029_v60 = vsub.f32 1.5, %v1028_v59 }
 0x5ac   :  { %v2828_v6 = vadd.f32 %v2262_v3, %v1040_v2 }
 0x5ad   :  { %v1030_v63 = vmul.f32 %v2303_v54, %v1029_v60  ;;  %v2263_v60 = vld [vmem:[%s192_s28] ss:$0 sm:$0xff] }
 0x5af   :  { %v1034_v0 = vsel %vm1033_vm11, %v2303_v54, %v1030_v63 }
 0x5b0   :  { %v1036_v1 = vmul.f32 %v1034_v0, %v2817_v53  ;;  %v2197_v53 = vld [vmem:[#allocation16 + $0x20] sm:$0xff] }
 0x5b1   :  { %1581 = vmatpush.bf16.msra.mxu2 %v2197_v53 }
 0x5b2   :  { %v1041_v4 = vmul.f32 %v2261_v62, %v1036_v1 }
 0x5b4   :  { %v2830_v7 = vadd.f32 %v2262_v3, %v1041_v4 }
 0x5b5   :  { %1582 = vmatpush.bf16.msra.mxu2 %v2196_v12 }
 0x5b6   :  { %v1047_v47 = vpack.c.bf16 %v2830_v7, %v2828_v6 }
 0x5b8   :  { %1258 = vmatmul.bf16.vlgmr.msrb.gmra.mxu2 %v1047_v47  ;;  %1272 = vmatmul.bf16.vlgmr.msra.gmra.mxu3 %v1047_v47 }
 0x5b9   :  { %1286 = vmatmul.bf16.vlgmr.msrb.gmra.mxu0 %v1047_v47  ;;  %1300 = vmatmul.bf16.vlgmr.msra.gmra.mxu1 %v1047_v47 }
 0x5ba   :  { %1583 = vmatpush.bf16.msra.mxu2 %v2195_v16 }
 0x5be   :  { %1584 = vmatpush.bf16.msra.mxu2 %v2194_v20 }
 0x5c2   :  { %1585 = vmatpush.bf16.msra.mxu2 %v2193_v22 }
 0x636   :  { %v1287_v25 = vpop.f32.mrf.mxu0  ;;  %v1301_v26 = vpop.f32.mrf.mxu1 }
 0x637   :  { %v1288_v30 = vadd.f32 %v1287_v25, %v1084_v27  ;;  %v1302_v32 = vadd.f32 %v1301_v26, %v1085_v28 }
 0x639   :  { %v1308_v38 = vmax.f32 %v1288_v30, 0.0  ;;  %v1309_v39 = vmax.f32 %v1302_v32, 0.0 }
 0x63b   :  { %v1259_v5 = vpop.f32.mrf.mxu2  ;;  %v1273_v29 = vpop.f32.mrf.mxu3 }
 0x63c   :  { %v1260_v42 = vadd.f32 %v1259_v5, %v1082_v31  ;;  %v1274_v43 = vadd.f32 %v1273_v29, %v1083_v34 }
 0x63e   :  { %v1289_v35 = vpop.f32.mrf.mxu0  ;;  %v1303_v36 = vpop.f32.mrf.mxu1  ;;  %v1306_v54 = vmax.f32 %v1260_v42, 0.0  ;;  %v1307_v55 = vmax.f32 %v1274_v43, 0.0 }
 0x63f   :  { %v1290_v33 = vadd.f32 %v1289_v35, %v1084_v27  ;;  %v1304_v37 = vadd.f32 %v1303_v36, %v1085_v28  ;;  %v2264_v35 = vld [vmem:[%s2873_s12] ss:$0 sm:$0xff]  ;;  %s1694_s12 = sshll.u32 %s2555_s27, 4  ;;  %s1695_s12 = int_to_ptr.vmem [resolvable:$true] %s1694_s12 }
 0x641   :  { %v1312_v40 = vmax.f32 %v1290_v33, 0.0  ;;  %v1313_v41 = vmax.f32 %v1304_v37, 0.0  ;;  %v2265_v37 = vld [vmem:[%s2874_s13] ss:$0 sm:$0xff] }
 0x643   :  { %v1316_v44 = vpack.c.bf16 %v1312_v40, %v1308_v38  ;;  %v1317_v46 = vpack.c.bf16 %v1313_v41, %v1309_v39  ;;  %v1261_v49 = vpop.f32.mrf.mxu2  ;;  %v1275_v50 = vpop.f32.mrf.mxu3 }
 0x644   :  { %v1262_v48 = vadd.f32 %v1261_v49, %v1082_v31  ;;  %v1276_v52 = vadd.f32 %v1275_v50, %v1083_v34 }
 0x645   :  { %1614 = vmatmul.bf16.vlgmr.msra.gmra.mxu0 %v1316_v44  ;;  %1628 = vmatmul.bf16.vlgmr.msrb.gmra.mxu1 %v1317_v46 }
 0x646   :  { %v1310_v56 = vmax.f32 %v1262_v48, 0.0  ;;  %v1311_v57 = vmax.f32 %v1276_v52, 0.0 }
 0x648   :  { %v1314_v58 = vpack.c.bf16 %v1310_v56, %v1306_v54  ;;  %v1315_v59 = vpack.c.bf16 %v1311_v57, %v1307_v55 }
 0x64a   :  { %1586 = vmatmul.bf16.vlgmr.msra.gmra.mxu2 %v1314_v58  ;;  %1600 = vmatmul.bf16.vlgmr.msrb.gmra.mxu3 %v1315_v59 }
 0x6c2   :  { %v1615_v0 = vpop.f32.mrf.mxu0  ;;  %v1629_v2 = vpop.f32.mrf.mxu1 }
 0x6ca   :  { %v1617_v10 = vpop.f32.mrf.mxu0  ;;  %v1631_v12 = vpop.f32.mrf.mxu1 }
 0x6cd   :  { %v1587_v61 = vpop.f32.mrf.mxu2  ;;  %v1601_v62 = vpop.f32.mrf.mxu3 }
 0x6ce   :  { %v1588_v63 = vadd.f32 %v2263_v60, %v1587_v61 }
 0x6d0   :  { %v1602_v1 = vadd.f32 %v1601_v62, %v1588_v63 }
 0x6d2   :  { %v1616_v3 = vadd.f32 %v1615_v0, %v1602_v1 }
 0x6d4   :  { %v1630_v4 = vadd.f32 %v1629_v2, %v1616_v3 }
 0x6d5   :  { %v1589_v47 = vpop.f32.mrf.mxu2  ;;  %v1603_v53 = vpop.f32.mrf.mxu3 }
 0x6d6   :  { %v1590_v8 = vadd.f32 %v2263_v60, %v1589_v47  ;;  %v1634_v9 = vadd.f32 %v1630_v4, %v2828_v6 }
 0x6d8   :  { %v1604_v51 = vadd.f32 %v1603_v53, %v1590_v8  ;;  %1638 = vadd.xlane.f32.xlu2 %v1634_v9 }
 0x6da   :  { %v1618_v11 = vadd.f32 %v1617_v10, %v1604_v51 }
 0x6dc   :  { %v1632_v13 = vadd.f32 %v1631_v12, %v1618_v11 }
 0x6de   :  { %v1635_v14 = vadd.f32 %v1632_v13, %v2830_v7 }
 0x6e0   :  { %1640 = vadd.xlane.f32.xlu0 %v1635_v14 }
 0x74b   :  { %v1639_v15 = vpop.xlane.xlu2 %1638 }
 0x74c   :  { %v1642_v16 = vmul.f32 %v1639_v15, %v2809_v45 }
 0x74e   :  { %v1644_v17 = vsub.f32 %v1634_v9, %v1642_v16 }
 0x750   :  { %v1646_v18 = vmul.f32 %v1644_v17, %v1644_v17 }
 0x752   :  { %1648 = vadd.xlane.f32.xlu0 %v1646_v18 }
 0x753   :  { %v1641_v19 = vpop.xlane.xlu0 %1640 }
 0x754   :  { %v1643_v20 = vmul.f32 %v1641_v19, %v2809_v45 }
 0x756   :  { %v1645_v6 = vsub.f32 %v1635_v14, %v1643_v20 }
 0x758   :  { %v1647_v21 = vmul.f32 %v1645_v6, %v1645_v6 }
 0x75a   :  { %1650 = vadd.xlane.f32.xlu0 %v1647_v21 }
 0x7c5   :  { %v1649_v22 = vpop.xlane.xlu0 %1648 }
 0x7c6   :  { %v1652_v23 = vmul.f32 %v1649_v22, %v2809_v45 }
 0x7c8   :  { %v1654_v24 = vadd.f32 1e-05, %v1652_v23 }
 0x7ca   :  { %2304 = vrsqrt.f32 %v1654_v24  ;;  %vm1662_vm13 = vweird.f32 %v1654_v24 }
 0x7cd   :  { %v1651_v25 = vpop.xlane.xlu0 %1650 }
 0x7ce   :  { %v1653_v7 = vmul.f32 %v1651_v25, %v2809_v45 }
 0x7d0   :  { %v2305_v26 = vpop.eup %2304  ;;  %v1655_v27 = vadd.f32 1e-05, %v1653_v7 }
 0x7d1   :  { %v1657_v28 = vmul.f32 %v2305_v26, %v1654_v24  ;;  %vm1663_vm12 = vweird.f32 %v2305_v26 }
 0x7d2   :  { %2306 = vrsqrt.f32 %v1655_v27  ;;  %vm1664_vm14 = vmor %vm1662_vm13, %vm1663_vm12  ;;  %vm1672_vm0 = vweird.f32 %v1655_v27 }
 0x7d3   :  { %v1658_v5 = vmul.f32 %v2305_v26, %v1657_v28 }
 0x7d5   :  { %v1659_v29 = vmul.f32 0.5, %v1658_v5 }
 0x7d7   :  { %v1660_v30 = vsub.f32 1.5, %v1659_v29 }
 0x7d8   :  { %v2307_v32 = vpop.eup %2306 }
 0x7d9   :  { %v1661_v31 = vmul.f32 %v2305_v26, %v1660_v30  ;;  %v1667_v34 = vmul.f32 %v2307_v32, %v1655_v27  ;;  %vm1673_vm15 = vweird.f32 %v2307_v32 }
 0x7da   :  { %vm1674_vm1 = vmor %vm1672_vm0, %vm1673_vm15 }
 0x7db   :  { %v1665_v36 = vsel %vm1664_vm14, %v2305_v26, %v1661_v31  ;;  %v1668_v33 = vmul.f32 %v2307_v32, %v1667_v34 }
 0x7dc   :  { %v1676_v45 = vmul.f32 %v1665_v36, %v1644_v17 }
 0x7dd   :  { %v1669_v38 = vmul.f32 0.5, %v1668_v33 }
 0x7de   :  { %v1681_v39 = vmul.f32 %v2264_v35, %v1676_v45 }
 0x7df   :  { %v1670_v40 = vsub.f32 1.5, %v1669_v38 }
 0x7e0   :  { %v1686_v41 = vadd.f32 %v2265_v37, %v1681_v39 }
 0x7e1   :  { %v1671_v42 = vmul.f32 %v2307_v32, %v1670_v40 }
 0x7e2   :  { %1688 = vst [vmem:[#allocation18] sm:$0xff] %v1686_v41 }
 0x7e3   :  { %v1675_v43 = vsel %vm1674_vm1, %v2307_v32, %v1671_v42 }
 0x7e4   :  { %v1677_v44 = vmul.f32 %v1675_v43, %v1645_v6 }
 0x7e6   :  { %v1682_v46 = vmul.f32 %v2264_v35, %v1677_v44 }
 0x7e8   :  { %v1687_v49 = vadd.f32 %v2265_v37, %v1682_v46 }
 0x7ea   :  { %1689 = vst [vmem:[#allocation18 + $0x8] sm:$0xff] %v1687_v49 }
 0x7eb   :  { %1702 = dma.vmem_to_hbm [thread:$0]  %s1695_s12, 256, %s1697_s22, [#allocation6], %s2544_s16, %s2544_s16, %s2545_s15  }
 0x7ec   :  { %2534 = dma.done.wait [#allocation6], 256  }
 0x7ed   :  { %2535 = vsyncadd [#allocation6], 4294967040 }
 0x7ee   :  { %1707 = vsyncpa [#allocation5], 1 }
 0x7ef   :  { %1708 = vsyncpa [#allocation8], 1 }
 0x7f0   :  { %1709 = vsyncpa [#allocation11], 1 }
 0x7f1   :  { %1710 = vsyncpa [#allocation14], 1 }
 0x7f2   :  { %1711 = vsyncpa [#allocation17], 1 }
 0x7f3   :  { %1712 = vsyncpa [#allocation6], 1 }

</bundles_post_ra>
